<compile_context>
chip_gen: v5e
topology: v5e:2x2
jax: 0.10.0
libtpu: 0.0.40
codegen_flags: <defaults>
</compile_context>

<pallas_src>
import jax
import jax.numpy as jnp
from jax.experimental import pallas as pl
from jax.experimental.pallas import tpu as pltpu


# ---------------------------------------------------------------------------
# In-kernel helpers
# ---------------------------------------------------------------------------
def _conv1_lrelu(x, w1, b1):
    """conv1 (1x1) + bias + LeakyReLU(0.2) in (C, P) orientation, f32 on the VPU.

    x: (Cin, tileP)   w1: (ndf, Cin)   b1: (ndf, 1)   ->  (ndf, tileP)
    """
    cin = x.shape[0]
    if cin <= 8:
        # Tiny contraction: VPU broadcast FMAs instead of wasting the MXU on K=4.
        h1 = b1 + w1[:, 0:1] * x[0:1, :]
        for c in range(1, cin):
            h1 = h1 + w1[:, c:c + 1] * x[c:c + 1, :]
    else:
        h1 = jnp.dot(w1.astype(jnp.bfloat16), x.astype(jnp.bfloat16),
                     preferred_element_type=jnp.float32) + b1
    # LeakyReLU(0.2) == max(h, 0.2*h) since the slope is positive.
    return jnp.maximum(h1, 0.2 * h1)


# ---------------------------------------------------------------------------
# Pass 1: per-tile Gram matrix of h1 + per-channel pixel sums (for BN stats)
# ---------------------------------------------------------------------------
def _stats_kernel(x_ref, w1_ref, b1_ref, g_ref, s_ref):
    x = x_ref[0]                                    # (Cin, tileP)
    h1 = _conv1_lrelu(x, w1_ref[...], b1_ref[...])  # (ndf, tileP) f32
    h1b = h1.astype(jnp.bfloat16)
    # Gram over the pixel axis on the MXU (bf16 operands, f32 accumulator):
    #   G = h1 @ h1^T  -> (ndf, ndf), lane-dense output tile.
    g = jax.lax.dot_general(h1b, h1b, (((1,), (1,)), ((), ())),
                            preferred_element_type=jnp.float32)
    g_ref[...] = g.reshape(1, 1, *g.shape)
    # Per-channel pixel sum of h1 (f32 lane reduce; XLU has slack here).
    s_ref[...] = jnp.sum(h1, axis=1, keepdims=True).reshape(1, 1, -1, 1)


# ---------------------------------------------------------------------------
# Pass 2: recompute h1, conv2 with folded BN scale, shift, LeakyReLU, conv3
# ---------------------------------------------------------------------------
def _apply_kernel(x_ref, w1_ref, b1_ref, w2s_ref, shift_ref, w3_ref, o_ref):
    x = x_ref[0]                                     # (Cin, tileP)
    h1 = _conv1_lrelu(x, w1_ref[...], b1_ref[...])   # (ndf, tileP) f32
    # conv2 with BN scale already folded into the bf16 weights; f32 accumulator.
    h2 = jnp.dot(w2s_ref[...], h1.astype(jnp.bfloat16),
                 preferred_element_type=jnp.float32)  # (2*ndf, tileP)
    h2 = h2 + shift_ref[...]                          # BN shift (single add)
    h3 = jnp.maximum(h2, 0.2 * h2)                    # LeakyReLU(0.2)
    # conv3 (1 output channel, no bias) on the MXU: w3 zero-padded to 8 rows so
    # all operand shapes are tile-friendly; only row 0 is the real filter.
    out = jnp.dot(w3_ref[...], h3.astype(jnp.bfloat16),
                  preferred_element_type=jnp.float32)  # (8, tileP)
    o_ref[...] = out[0:1, :].reshape(1, 1, -1)         # lane-dense (1, tileP)


# ---------------------------------------------------------------------------
# Wrapper
# ---------------------------------------------------------------------------
def _choose_tile_p(hw, n_batch):
    """Lane-dense pixel tile: multiple of 128 lanes, capped at 8192 so f32
    intermediates + double-buffered IO fit comfortably even in v7x's 64 MiB."""
    cap = 8192
    hw128 = ((hw + 127) // 128) * 128
    tile = min(cap, hw128)
    # Megacore load balance (v7x has 2 TensorCores): if the whole problem would
    # otherwise be a single grid step, split it so both cores get work.
    if n_batch == 1 and hw128 <= cap and hw128 >= 256:
        tile = (((hw128 // 2) + 127) // 128) * 128
    return tile


def pixel_discriminator_forward(x_nchw, params):
    """x_nchw: (N, Cin, H, W) float32. Returns (N, 1, H, W) float32."""
    N, Cin, H, W = x_nchw.shape
    HW = H * W
    w1, b1, w2, gamma, beta, w3 = params
    ndf = w1.shape[0]
    ndf2 = w2.shape[0]

    tile_p = _choose_tile_p(HW, N)
    n_p = -(-HW // tile_p)          # ceil
    hw_pad = n_p * tile_p
    n_pad = hw_pad - HW             # padded pixels per image

    # NCHW -> (N, Cin, H*W): pure reshape, no transpose / extra HBM traffic.
    x3 = x_nchw.reshape(N, Cin, HW)
    if n_pad:
        x3 = jnp.pad(x3, ((0, 0), (0, 0), (0, n_pad)))

    # Scoped-VMEM budget: ~2x the live per-tile intermediates, clamped 16-40 MiB
    # (leaves headroom on v7x's 64 MiB physical VMEM).
    per_tile = tile_p * (8 * Cin + 6 * ndf + 10 * ndf2 + 8)
    vmem_limit = int(min(40 << 20, max(16 << 20, 2 * per_tile)))
    cparams = pltpu.CompilerParams(
        dimension_semantics=("parallel", "parallel"),
        vmem_limit_bytes=vmem_limit,
    )

    x_spec = pl.BlockSpec((1, Cin, tile_p), lambda n, p: (n, 0, p))
    w1_spec = pl.BlockSpec((ndf, Cin), lambda n, p: (0, 0))
    b1_spec = pl.BlockSpec((ndf, 1), lambda n, p: (0, 0))

    # ---- Pass 1: per-tile Gram of h1 and per-channel pixel sums ----
    g_parts, s_parts = pl.pallas_call(
        _stats_kernel,
        grid=(N, n_p),
        in_specs=[x_spec, w1_spec, b1_spec],
        out_specs=(
            pl.BlockSpec((1, 1, ndf, ndf), lambda n, p: (n, p, 0, 0)),
            pl.BlockSpec((1, 1, ndf, 1), lambda n, p: (n, p, 0, 0)),
        ),
        out_shape=(
            jax.ShapeDtypeStruct((N, n_p, ndf, ndf), jnp.float32),
            jax.ShapeDtypeStruct((N, n_p, ndf, 1), jnp.float32),
        ),
        compiler_params=cparams,
    )(x3, w1, b1)

    # ---- BatchNorm batch stats + folding (tiny, plain XLA) ----
    g_tot = jnp.sum(g_parts, axis=(0, 1))            # (ndf, ndf)
    s_tot = jnp.sum(s_parts, axis=(0, 1))            # (ndf, 1)
    if n_pad:
        # Padded pixels see x == 0, so their h1 is the constant leaky_relu(b1);
        # subtract their contribution instead of masking inside the kernel.
        h1_pad = jnp.maximum(b1, 0.2 * b1)                         # (ndf, 1) f32
        h1_pad_bf = h1_pad.astype(jnp.bfloat16).astype(jnp.float32)
        npad_tot = float(N * n_pad)
        s_tot = s_tot - npad_tot * h1_pad
        g_tot = g_tot - npad_tot * (h1_pad_bf @ h1_pad_bf.T)

    p_total = float(N * HW)
    # Linearity of conv2: sum_p h2 = w2 @ sum_p h1 ; sum_p h2^2 = rowsum((w2@G)*w2)
    mean = (w2 @ s_tot) / p_total                                # (2*ndf, 1)
    sumsq = jnp.sum((w2 @ g_tot) * w2, axis=1, keepdims=True)    # (2*ndf, 1)
    # TODO(synk): E[x^2]-E[x]^2 cancels badly if |mean| >> std with trained
    # weights; fine at the 0.02-scale init (PyTorch training-mode BN semantics).
    var = jnp.maximum(sumsq / p_total - mean * mean, 0.0)        # biased variance
    scale = gamma * jax.lax.rsqrt(var + 1e-5)
    shift = beta - mean * scale

    # Fold the BN scale into conv2 and cast MXU operands to bf16 once here.
    w2_scaled = (w2 * scale).astype(jnp.bfloat16)                # (2*ndf, ndf)
    # conv3 filter as an (8, 2*ndf) bf16 block (rows 1..7 zero) -> tile-friendly
    # MXU shapes instead of a 128-sublane VPU/XLU reduce.
    w3_rows = jnp.zeros((8, ndf2), jnp.float32).at[0, :].set(w3[:, 0])
    w3_rows = w3_rows.astype(jnp.bfloat16)

    # ---- Pass 2: conv1 -> folded conv2+BN -> LeakyReLU -> conv3 ----
    out3 = pl.pallas_call(
        _apply_kernel,
        grid=(N, n_p),
        in_specs=[x_spec, w1_spec, b1_spec,
                  pl.BlockSpec((ndf2, ndf), lambda n, p: (0, 0)),
                  pl.BlockSpec((ndf2, 1), lambda n, p: (0, 0)),
                  pl.BlockSpec((8, ndf2), lambda n, p: (0, 0))],
        out_specs=pl.BlockSpec((1, 1, tile_p), lambda n, p: (n, 0, p)),
        out_shape=jax.ShapeDtypeStruct((N, 1, hw_pad), jnp.float32),
        compiler_params=cparams,
    )(x3, w1, b1, w2_scaled, shift, w3_rows)

    if n_pad:
        out3 = out3[:, :, :HW]
    return out3.reshape(N, 1, H, W)


# ---------------------------------------------------------------------------
# Parameters & reference
# ---------------------------------------------------------------------------
def make_params(key, input_nc, ndf):
    """Deterministic synthetic parameters matching the PyTorch module's shapes,
    stored in the kernel's (out_channels, in_channels) / column orientation."""
    k1, k2, k3, k4 = jax.random.split(key, 4)
    w1 = jax.random.normal(k1, (ndf, input_nc), jnp.float32) * 0.02
    b1 = jax.random.normal(k2, (ndf, 1), jnp.float32) * 0.02
    w2 = jax.random.normal(k3, (2 * ndf, ndf), jnp.float32) * 0.02
    gamma = jnp.ones((2 * ndf, 1), jnp.float32)    # BatchNorm weight init
    beta = jnp.zeros((2 * ndf, 1), jnp.float32)    # BatchNorm bias init
    w3 = jax.random.normal(k4, (2 * ndf, 1), jnp.float32) * 0.02
    return (w1, b1, w2, gamma, beta, w3)


def _reference_forward(x_nchw, params):
    """Pure-JAX f32 reference (PyTorch training-mode BatchNorm semantics)."""
    w1, b1, w2, gamma, beta, w3 = params
    N, Cin, H, W = x_nchw.shape
    x = jnp.transpose(x_nchw, (0, 2, 3, 1)).reshape(-1, Cin)   # (P, Cin)
    h1 = x @ w1.T + b1[:, 0]
    h1 = jnp.where(h1 >= 0, h1, 0.2 * h1)
    h2 = h1 @ w2.T
    mean = jnp.mean(h2, axis=0, keepdims=True)
    var = jnp.mean((h2 - mean) ** 2, axis=0, keepdims=True)
    h2n = (h2 - mean) / jnp.sqrt(var + 1e-5) * gamma[:, 0] + beta[:, 0]
    h3 = jnp.where(h2n >= 0, h2n, 0.2 * h2n)
    out = h3 @ w3                                              # (P, 1)
    return jnp.transpose(out.reshape(N, H, W, 1), (0, 3, 1, 2))


if __name__ == "__main__":
    # Small shapes consistent with the module: batch=2, input_nc=4, spatial=16.
    N, Cin, H, W = 2, 4, 16, 16
    ndf = 64

    key = jax.random.PRNGKey(0)
    k_x, k_p = jax.random.split(key)
    x = jax.random.normal(k_x, (N, Cin, H, W), jnp.float32)
    params = make_params(k_p, Cin, ndf)

    fwd = jax.jit(pixel_discriminator_forward)
    out = jax.block_until_ready(fwd(x, params))

    ref = _reference_forward(x, params)
    assert out.shape == (N, 1, H, W), out.shape
    # Tolerance loosened slightly vs pure-f32 since conv2/Gram/conv3 run with
    # bf16 MXU operands (f32 accumulation).
    assert jnp.allclose(out, ref, atol=2e-2, rtol=2e-2), "mismatch vs reference"

    print("KERNEL_OK")
</pallas_src>

<mosaic_0001>
module attributes {stable_mosaic.version = 11 : i64} {
  func.func @_stats_kernel(%arg0: i32, %arg1: i32, %arg2: memref<1x4x256xf32, #tpu.memory_space<vmem>>, %arg3: memref<64x4xf32, #tpu.memory_space<vmem>>, %arg4: memref<64x1xf32, #tpu.memory_space<vmem>>, %arg5: memref<1x1x64x64xf32, #tpu.memory_space<vmem>>, %arg6: memref<1x1x64x1xf32, #tpu.memory_space<vmem>>) attributes {dimension_semantics = [#tpu.dimension_semantics<parallel>, #tpu.dimension_semantics<parallel>], iteration_bounds = array<i64: 2, 1>, scalar_prefetch = 0 : i64, scratch_operands = 0 : i64, tpu.core_type = #tpu.core_type<tc>, window_params = [{transform_indices = @transform_0, window_bounds = array<i64: 1, 4, 256>}, {pipeline_mode = #tpu.pipeline_mode<synchronous>, transform_indices = @transform_1, window_bounds = array<i64: 64, 4>}, {pipeline_mode = #tpu.pipeline_mode<synchronous>, transform_indices = @transform_2, window_bounds = array<i64: 64, 1>}, {transform_indices = @transform_3, window_bounds = array<i64: 1, 1, 64, 64>}, {transform_indices = @transform_4, window_bounds = array<i64: 1, 1, 64, 1>}]} {
    %c0 = arith.constant 0 : index
    %c0_0 = arith.constant 0 : index
    %c0_1 = arith.constant 0 : index
    %0 = vector.load %arg2[%c0, %c0_0, %c0_1] : memref<1x4x256xf32, #tpu.memory_space<vmem>>, vector<1x4x256xf32>
    %1 = vector.shape_cast %0 : vector<1x4x256xf32> to vector<4x256xf32>
    %c0_2 = arith.constant 0 : index
    %c0_3 = arith.constant 0 : index
    %2 = vector.load %arg3[%c0_2, %c0_3] : memref<64x4xf32, #tpu.memory_space<vmem>>, vector<64x4xf32>
    %c0_4 = arith.constant 0 : index
    %c0_5 = arith.constant 0 : index
    %3 = vector.load %arg4[%c0_4, %c0_5] : memref<64x1xf32, #tpu.memory_space<vmem>>, vector<64x1xf32>
    %4 = vector.extract_strided_slice %2 {offsets = [0, 0], sizes = [64, 1], strides = [1, 1]} : vector<64x4xf32> to vector<64x1xf32>
    %5 = vector.extract_strided_slice %1 {offsets = [0, 0], sizes = [1, 256], strides = [1, 1]} : vector<4x256xf32> to vector<1x256xf32>
    %6 = vector.broadcast %4 : vector<64x1xf32> to vector<64x256xf32>
    %7 = vector.broadcast %5 : vector<1x256xf32> to vector<64x256xf32>
    %8 = arith.mulf %6, %7 : vector<64x256xf32>
    %9 = vector.broadcast %3 : vector<64x1xf32> to vector<64x256xf32>
    %10 = arith.addf %9, %8 : vector<64x256xf32>
    %11 = vector.extract_strided_slice %2 {offsets = [0, 1], sizes = [64, 1], strides = [1, 1]} : vector<64x4xf32> to vector<64x1xf32>
    %12 = vector.extract_strided_slice %1 {offsets = [1, 0], sizes = [1, 256], strides = [1, 1]} : vector<4x256xf32> to vector<1x256xf32>
    %13 = vector.broadcast %11 : vector<64x1xf32> to vector<64x256xf32>
    %14 = vector.broadcast %12 : vector<1x256xf32> to vector<64x256xf32>
    %15 = arith.mulf %13, %14 : vector<64x256xf32>
    %16 = arith.addf %10, %15 : vector<64x256xf32>
    %17 = vector.extract_strided_slice %2 {offsets = [0, 2], sizes = [64, 1], strides = [1, 1]} : vector<64x4xf32> to vector<64x1xf32>
    %18 = vector.extract_strided_slice %1 {offsets = [2, 0], sizes = [1, 256], strides = [1, 1]} : vector<4x256xf32> to vector<1x256xf32>
    %19 = vector.broadcast %17 : vector<64x1xf32> to vector<64x256xf32>
    %20 = vector.broadcast %18 : vector<1x256xf32> to vector<64x256xf32>
    %21 = arith.mulf %19, %20 : vector<64x256xf32>
    %22 = arith.addf %16, %21 : vector<64x256xf32>
    %23 = vector.extract_strided_slice %2 {offsets = [0, 3], sizes = [64, 1], strides = [1, 1]} : vector<64x4xf32> to vector<64x1xf32>
    %24 = vector.extract_strided_slice %1 {offsets = [3, 0], sizes = [1, 256], strides = [1, 1]} : vector<4x256xf32> to vector<1x256xf32>
    %25 = vector.broadcast %23 : vector<64x1xf32> to vector<64x256xf32>
    %26 = vector.broadcast %24 : vector<1x256xf32> to vector<64x256xf32>
    %27 = arith.mulf %25, %26 : vector<64x256xf32>
    %28 = arith.addf %22, %27 : vector<64x256xf32>
    %cst = arith.constant 2.000000e-01 : f32
    %29 = vector.broadcast %cst : f32 to vector<64x256xf32>
    %30 = arith.mulf %29, %28 : vector<64x256xf32>
    %31 = arith.maximumf %28, %30 : vector<64x256xf32>
    %32 = arith.truncf %31 : vector<64x256xf32> to vector<64x256xbf16>
    %cst_6 = arith.constant dense<0.000000e+00> : vector<64x64xf32>
    %33 = tpu.matmul %32, %32, %cst_6 {dimension_numbers = #tpu.dot_dimension_numbers<[1], [1], [0], [0], [0, 0, 1, 0], [], []>} : vector<64x256xbf16>, vector<64x256xbf16>, vector<64x64xf32> -> vector<64x64xf32>
    %34 = vector.shape_cast %33 : vector<64x64xf32> to vector<1x1x64x64xf32>
    %c0_7 = arith.constant 0 : index
    %c0_8 = arith.constant 0 : index
    %c0_9 = arith.constant 0 : index
    %c0_10 = arith.constant 0 : index
    %35 = vector.load %arg5[%c0_7, %c0_8, %c0_9, %c0_10] : memref<1x1x64x64xf32, #tpu.memory_space<vmem>>, vector<1x1x64x64xf32>
    tpu.vector_store %arg5[%c0_7, %c0_8, %c0_9, %c0_10], %34 {strides = array<i32>} : memref<1x1x64x64xf32, #tpu.memory_space<vmem>>, vector<1x1x64x64xf32>,
    %cst_11 = arith.constant dense<0.000000e+00> : vector<64xf32>
    %36 = vector.multi_reduction <add>, %31, %cst_11 [1] : vector<64x256xf32> to vector<64xf32>
    %37 = vector.shape_cast %36 : vector<64xf32> to vector<64x1xf32>
    %38 = vector.shape_cast %37 : vector<64x1xf32> to vector<1x1x64x1xf32>
    %c0_12 = arith.constant 0 : index
    %c0_13 = arith.constant 0 : index
    %c0_14 = arith.constant 0 : index
    %c0_15 = arith.constant 0 : index
    %39 = vector.load %arg6[%c0_12, %c0_13, %c0_14, %c0_15] : memref<1x1x64x1xf32, #tpu.memory_space<vmem>>, vector<1x1x64x1xf32>
    tpu.vector_store %arg6[%c0_12, %c0_13, %c0_14, %c0_15], %38 {strides = array<i32>} : memref<1x1x64x1xf32, #tpu.memory_space<vmem>>, vector<1x1x64x1xf32>,
    return
  }
  func.func @transform_0(%arg0: i32, %arg1: i32) -> (i32, i32, i32) {
    %c0_i32 = arith.constant 0 : i32
    %c0_i32_0 = arith.constant 0 : i32
    return %arg0, %c0_i32, %arg1 : i32, i32, i32
  }
  func.func @transform_1(%arg0: i32, %arg1: i32) -> (i32, i32) {
    %c0_i32 = arith.constant 0 : i32
    %c0_i32_0 = arith.constant 0 : i32
    %c0_i32_1 = arith.constant 0 : i32
    return %c0_i32, %c0_i32_0 : i32, i32
  }
  func.func @transform_2(%arg0: i32, %arg1: i32) -> (i32, i32) {
    %c0_i32 = arith.constant 0 : i32
    %c0_i32_0 = arith.constant 0 : i32
    %c0_i32_1 = arith.constant 0 : i32
    return %c0_i32, %c0_i32_0 : i32, i32
  }
  func.func @transform_3(%arg0: i32, %arg1: i32) -> (i32, i32, i32, i32) {
    %c0_i32 = arith.constant 0 : i32
    %c0_i32_0 = arith.constant 0 : i32
    %c0_i32_1 = arith.constant 0 : i32
    return %arg0, %arg1, %c0_i32, %c0_i32_0 : i32, i32, i32, i32
  }
  func.func @transform_4(%arg0: i32, %arg1: i32) -> (i32, i32, i32, i32) {
    %c0_i32 = arith.constant 0 : i32
    %c0_i32_0 = arith.constant 0 : i32
    %c0_i32_1 = arith.constant 0 : i32
    return %arg0, %arg1, %c0_i32, %c0_i32_0 : i32, i32, i32, i32
  }
}

module attributes {stable_mosaic.version = 11 : i64} {
  func.func @_apply_kernel(%arg0: i32, %arg1: i32, %arg2: memref<1x4x256xf32, #tpu.memory_space<vmem>>, %arg3: memref<64x4xf32, #tpu.memory_space<vmem>>, %arg4: memref<64x1xf32, #tpu.memory_space<vmem>>, %arg5: memref<128x64xbf16, #tpu.memory_space<vmem>>, %arg6: memref<128x1xf32, #tpu.memory_space<vmem>>, %arg7: memref<8x128xbf16, #tpu.memory_space<vmem>>, %arg8: memref<1x1x256xf32, #tpu.memory_space<vmem>>) attributes {dimension_semantics = [#tpu.dimension_semantics<parallel>, #tpu.dimension_semantics<parallel>], iteration_bounds = array<i64: 2, 1>, scalar_prefetch = 0 : i64, scratch_operands = 0 : i64, tpu.core_type = #tpu.core_type<tc>, window_params = [{transform_indices = @transform_0, window_bounds = array<i64: 1, 4, 256>}, {pipeline_mode = #tpu.pipeline_mode<synchronous>, transform_indices = @transform_1, window_bounds = array<i64: 64, 4>}, {pipeline_mode = #tpu.pipeline_mode<synchronous>, transform_indices = @transform_2, window_bounds = array<i64: 64, 1>}, {pipeline_mode = #tpu.pipeline_mode<synchronous>, transform_indices = @transform_3, window_bounds = array<i64: 128, 64>}, {pipeline_mode = #tpu.pipeline_mode<synchronous>, transform_indices = @transform_4, window_bounds = array<i64: 128, 1>}, {pipeline_mode = #tpu.pipeline_mode<synchronous>, transform_indices = @transform_5, window_bounds = array<i64: 8, 128>}, {transform_indices = @transform_6, window_bounds = array<i64: 1, 1, 256>}]} {
    %c0 = arith.constant 0 : index
    %c0_0 = arith.constant 0 : index
    %c0_1 = arith.constant 0 : index
    %0 = vector.load %arg2[%c0, %c0_0, %c0_1] : memref<1x4x256xf32, #tpu.memory_space<vmem>>, vector<1x4x256xf32>
    %1 = vector.shape_cast %0 : vector<1x4x256xf32> to vector<4x256xf32>
    %c0_2 = arith.constant 0 : index
    %c0_3 = arith.constant 0 : index
    %2 = vector.load %arg3[%c0_2, %c0_3] : memref<64x4xf32, #tpu.memory_space<vmem>>, vector<64x4xf32>
    %c0_4 = arith.constant 0 : index
    %c0_5 = arith.constant 0 : index
    %3 = vector.load %arg4[%c0_4, %c0_5] : memref<64x1xf32, #tpu.memory_space<vmem>>, vector<64x1xf32>
    %4 = vector.extract_strided_slice %2 {offsets = [0, 0], sizes = [64, 1], strides = [1, 1]} : vector<64x4xf32> to vector<64x1xf32>
    %5 = vector.extract_strided_slice %1 {offsets = [0, 0], sizes = [1, 256], strides = [1, 1]} : vector<4x256xf32> to vector<1x256xf32>
    %6 = vector.broadcast %4 : vector<64x1xf32> to vector<64x256xf32>
    %7 = vector.broadcast %5 : vector<1x256xf32> to vector<64x256xf32>
    %8 = arith.mulf %6, %7 : vector<64x256xf32>
    %9 = vector.broadcast %3 : vector<64x1xf32> to vector<64x256xf32>
    %10 = arith.addf %9, %8 : vector<64x256xf32>
    %11 = vector.extract_strided_slice %2 {offsets = [0, 1], sizes = [64, 1], strides = [1, 1]} : vector<64x4xf32> to vector<64x1xf32>
    %12 = vector.extract_strided_slice %1 {offsets = [1, 0], sizes = [1, 256], strides = [1, 1]} : vector<4x256xf32> to vector<1x256xf32>
    %13 = vector.broadcast %11 : vector<64x1xf32> to vector<64x256xf32>
    %14 = vector.broadcast %12 : vector<1x256xf32> to vector<64x256xf32>
    %15 = arith.mulf %13, %14 : vector<64x256xf32>
    %16 = arith.addf %10, %15 : vector<64x256xf32>
    %17 = vector.extract_strided_slice %2 {offsets = [0, 2], sizes = [64, 1], strides = [1, 1]} : vector<64x4xf32> to vector<64x1xf32>
    %18 = vector.extract_strided_slice %1 {offsets = [2, 0], sizes = [1, 256], strides = [1, 1]} : vector<4x256xf32> to vector<1x256xf32>
    %19 = vector.broadcast %17 : vector<64x1xf32> to vector<64x256xf32>
    %20 = vector.broadcast %18 : vector<1x256xf32> to vector<64x256xf32>
    %21 = arith.mulf %19, %20 : vector<64x256xf32>
    %22 = arith.addf %16, %21 : vector<64x256xf32>
    %23 = vector.extract_strided_slice %2 {offsets = [0, 3], sizes = [64, 1], strides = [1, 1]} : vector<64x4xf32> to vector<64x1xf32>
    %24 = vector.extract_strided_slice %1 {offsets = [3, 0], sizes = [1, 256], strides = [1, 1]} : vector<4x256xf32> to vector<1x256xf32>
    %25 = vector.broadcast %23 : vector<64x1xf32> to vector<64x256xf32>
    %26 = vector.broadcast %24 : vector<1x256xf32> to vector<64x256xf32>
    %27 = arith.mulf %25, %26 : vector<64x256xf32>
    %28 = arith.addf %22, %27 : vector<64x256xf32>
    %cst = arith.constant 2.000000e-01 : f32
    %29 = vector.broadcast %cst : f32 to vector<64x256xf32>
    %30 = arith.mulf %29, %28 : vector<64x256xf32>
    %31 = arith.maximumf %28, %30 : vector<64x256xf32>
    %c0_6 = arith.constant 0 : index
    %c0_7 = arith.constant 0 : index
    %32 = vector.load %arg5[%c0_6, %c0_7] : memref<128x64xbf16, #tpu.memory_space<vmem>>, vector<128x64xbf16>
    %33 = arith.truncf %31 : vector<64x256xf32> to vector<64x256xbf16>
    %cst_8 = arith.constant dense<0.000000e+00> : vector<128x256xf32>
    %34 = tpu.matmul %32, %33, %cst_8 {dimension_numbers = #tpu.dot_dimension_numbers<[1], [0], [0], [1], [0, 0, 1, 1], [], []>} : vector<128x64xbf16>, vector<64x256xbf16>, vector<128x256xf32> -> vector<128x256xf32>
    %c0_9 = arith.constant 0 : index
    %c0_10 = arith.constant 0 : index
    %35 = vector.load %arg6[%c0_9, %c0_10] : memref<128x1xf32, #tpu.memory_space<vmem>>, vector<128x1xf32>
    %36 = vector.broadcast %35 : vector<128x1xf32> to vector<128x256xf32>
    %37 = arith.addf %34, %36 : vector<128x256xf32>
    %cst_11 = arith.constant 2.000000e-01 : f32
    %38 = vector.broadcast %cst_11 : f32 to vector<128x256xf32>
    %39 = arith.mulf %38, %37 : vector<128x256xf32>
    %40 = arith.maximumf %37, %39 : vector<128x256xf32>
    %c0_12 = arith.constant 0 : index
    %c0_13 = arith.constant 0 : index
    %41 = vector.load %arg7[%c0_12, %c0_13] : memref<8x128xbf16, #tpu.memory_space<vmem>>, vector<8x128xbf16>
    %42 = arith.truncf %40 : vector<128x256xf32> to vector<128x256xbf16>
    %cst_14 = arith.constant dense<0.000000e+00> : vector<8x256xf32>
    %43 = tpu.matmul %41, %42, %cst_14 {dimension_numbers = #tpu.dot_dimension_numbers<[1], [0], [0], [1], [0, 0, 1, 1], [], []>} : vector<8x128xbf16>, vector<128x256xbf16>, vector<8x256xf32> -> vector<8x256xf32>
    %44 = vector.extract_strided_slice %43 {offsets = [0, 0], sizes = [1, 256], strides = [1, 1]} : vector<8x256xf32> to vector<1x256xf32>
    %45 = vector.shape_cast %44 : vector<1x256xf32> to vector<1x1x256xf32>
    %c0_15 = arith.constant 0 : index
    %c0_16 = arith.constant 0 : index
    %c0_17 = arith.constant 0 : index
    %46 = vector.load %arg8[%c0_15, %c0_16, %c0_17] : memref<1x1x256xf32, #tpu.memory_space<vmem>>, vector<1x1x256xf32>
    tpu.vector_store %arg8[%c0_15, %c0_16, %c0_17], %45 {strides = array<i32>} : memref<1x1x256xf32, #tpu.memory_space<vmem>>, vector<1x1x256xf32>,
    return
  }
  func.func @transform_0(%arg0: i32, %arg1: i32) -> (i32, i32, i32) {
    %c0_i32 = arith.constant 0 : i32
    %c0_i32_0 = arith.constant 0 : i32
    return %arg0, %c0_i32, %arg1 : i32, i32, i32
  }
  func.func @transform_1(%arg0: i32, %arg1: i32) -> (i32, i32) {
    %c0_i32 = arith.constant 0 : i32
    %c0_i32_0 = arith.constant 0 : i32
    %c0_i32_1 = arith.constant 0 : i32
    return %c0_i32, %c0_i32_0 : i32, i32
  }
  func.func @transform_2(%arg0: i32, %arg1: i32) -> (i32, i32) {
    %c0_i32 = arith.constant 0 : i32
    %c0_i32_0 = arith.constant 0 : i32
    %c0_i32_1 = arith.constant 0 : i32
    return %c0_i32, %c0_i32_0 : i32, i32
  }
  func.func @transform_3(%arg0: i32, %arg1: i32) -> (i32, i32) {
    %c0_i32 = arith.constant 0 : i32
    %c0_i32_0 = arith.constant 0 : i32
    %c0_i32_1 = arith.constant 0 : i32
    return %c0_i32, %c0_i32_0 : i32, i32
  }
  func.func @transform_4(%arg0: i32, %arg1: i32) -> (i32, i32) {
    %c0_i32 = arith.constant 0 : i32
    %c0_i32_0 = arith.constant 0 : i32
    %c0_i32_1 = arith.constant 0 : i32
    return %c0_i32, %c0_i32_0 : i32, i32
  }
  func.func @transform_5(%arg0: i32, %arg1: i32) -> (i32, i32) {
    %c0_i32 = arith.constant 0 : i32
    %c0_i32_0 = arith.constant 0 : i32
    %c0_i32_1 = arith.constant 0 : i32
    return %c0_i32, %c0_i32_0 : i32, i32
  }
  func.func @transform_6(%arg0: i32, %arg1: i32) -> (i32, i32, i32) {
    %c0_i32 = arith.constant 0 : i32
    %c0_i32_0 = arith.constant 0 : i32
    return %arg0, %c0_i32, %arg1 : i32, i32, i32
  }
}

</mosaic_0001>

<bundles_post_ra>
// kernel: pixel_discriminator_forward.2
= control target key start
LH: loop header
LB: loop body
LE: loop exit
PB: predicated region body
PF: predicated region fallthrough
CT: control target
= control target key end

     0   :  { %s1025_s15 = smov 0   ;;  %s1027_s16 = smov 0   ;;  %s1386_s0 = inlined_call_operand.vmem [shape: f32[2,4,256], index: 0, kind: input, shape index: {}]   ;;  %s1387_s1 = inlined_call_operand.vmem [shape: f32[64,4], index: 1, kind: input, shape index: {}]   ;;  %s1388_s2 = inlined_call_operand.vmem [shape: f32[64,1], index: 2, kind: input, shape index: {}]   ;;  %s1389_s3 = inlined_call_operand.vmem [shape: f32[2,1,64,64], index: 3, kind: output, shape index: {0}]   ;;  %s1390_s4 = inlined_call_operand.vmem [shape: f32[2,1,64,1], index: 4, kind: output, shape index: {1}]  }
   0x1   :  { %s1029_s17 = smov 0  }
   0x2 LB: > { %s27_s18 = sadd.s32 1, %s990_s16  ;;  %p892_p0 = scmp.ge.s32.totalorder %s994_s17, 1  ;;  %s994_s17 = sphi %s1029_s17, %s15_s17   ;;  %s990_s16 = sphi %s1027_s16, %s1392_s16   ;;  %s986_s15 = sphi %s1025_s15, %s1391_s15  }
   0x3   : > { %p29_p1 = scmp.ge.s32.totalorder %s27_s18, 2  ;;  %p188_p2 = scmp.lt.s32.totalorder %s994_s17, 3 }
   0x5   : > { %s1394_s18 = smov (%p29_p1, %s27_s18), 0  ;;  %p189_p3 = pnand %p892_p0, %p188_p2 }
   0x6   : > { %p232_p4 = scmp.lt.s32.totalorder (!%p189_p3), %s986_s15, 1 }
   0x7   : > { %192 = sbr.rel (%p189_p3) target bundleno = 433 (0x1b1), region = 32 }
   0xc   : > { %v267_v0 = vld [vmem:[%s1387_s1 + $0x30] sm:$0xff]  ;;  %v265_v1 = vld [vmem:[%s1387_s1 + $0x20] sm:$0xff]  ;;  %v996_v3 = vmov 2   ;;  %v997_v4 = vmov 0   ;;  %v266_v5 = vld [vmem:[%s1387_s1 + $0x28] sm:$0xff]  ;;  %v998_v7 = vmov 3  }
   0xd   : > { %v1054_v2 = vld [vmem:[%s1387_s1 + $0x10] sm:$0xff]  ;;  %944 = vset.pattern.permute.xlu0 %v996_v3  ;;  %941 = vset.pattern.permute.xlu2 %v997_v4  ;;  %v1066_v6 = vld [vmem:[%s1387_s1 + $0x18] sm:$0xff]  ;;  %v999_v10 = vmov 1   ;;  %v1083_v11 = vld [vmem:[%s1387_s1] sm:$0xff]  ;;  %s1396_s15 = smov (!%p232_p4, %s986_s15), 1  ;;  %vm737_vm0 = vcmask 7168  }
   0xe   : > { %940 = vset.pattern.permute.xlu1 %v997_v4  ;;  %491 = vperm.xlu0 %944, %v267_v0   ;;  %v275_v8 = vld [vmem:[%s1388_s2 + $0x30] sm:$0xff]  ;;  %v268_v9 = vld [vmem:[%s1387_s1 + $0x38] sm:$0xff]  ;;  %v1090_v12 = vld [vmem:[%s1387_s1 + $0x8] sm:$0xff]  ;;  %s901_s29 = sshll.u32 %s1396_s15, 3  ;;  %s902_s7 = sshll.u32 %s1396_s15, 6  ;;  %vm704_vm1 = vcmask 523264  }
   0xf   : > { %299 = vperm.xlu2 %941, %v265_v1   ;;  %289 = vperm.xlu1 %940, %v1054_v2   ;;  %v273_v13 = vld [vmem:[%s1388_s2 + $0x20] sm:$0xff]  ;;  %v276_v14 = vld [vmem:[%s1388_s2 + $0x38] sm:$0xff]  ;;  %v274_v15 = vld [vmem:[%s1388_s2 + $0x28] sm:$0xff]  ;;  %s239_s6 = scalar_lea.vmem %s1386_s0, %s901_s29  ;;  %s258_s10 = scalar_lea.vmem %s1390_s4, %s902_s7 }
  0x10   : > { %v269_v16 = vld [vmem:[%s1388_s2] sm:$0xff]  ;;  %v271_v17 = vld [vmem:[%s1388_s2 + $0x10] sm:$0xff]  ;;  %v272_v18 = vld [vmem:[%s1388_s2 + $0x18] sm:$0xff]  ;;  %s1358_s12 = scalar_lea.vmem %s1389_s3, %s902_s7 }
  0x11   : > { %v270_v21 = vld [vmem:[%s1388_s2 + $0x8] sm:$0xff]  ;;  %v260_v37 = vld [vmem:[%s239_s6] sm:$0xff] }
  0x12   : > { %v318_v38 = vperm.slane %v260_v37, 0  ;;  %v319_v39 = vperm.slane %v260_v37, 4  ;;  %v428_v40 = vperm.slane %v260_v37, 1  ;;  %v429_v41 = vperm.slane %v260_v37, 5 }
  0x13   : > { %v498_v42 = vperm.slane %v260_v37, 2  ;;  %v499_v43 = vperm.slane %v260_v37, 6  ;;  %v568_v50 = vperm.slane %v260_v37, 3  ;;  %v569_v51 = vperm.slane %v260_v37, 7 }
  0x14   : > { %v1177_v44 = vperm.slane %v318_v38, 0  ;;  %v1179_v45 = vperm.slane %v319_v39, 0  ;;  %v1181_v46 = vperm.slane %v428_v40, 1  ;;  %v1183_v47 = vperm.slane %v429_v41, 1 }
  0x15   : > { %v1189_v55 = vperm.slane %v498_v42, 2  ;;  %v1191_v56 = vperm.slane %v499_v43, 2  ;;  %v1195_v61 = vperm.slane %v568_v50, 3  ;;  %v1197_v62 = vperm.slane %v569_v51, 3 }
  0x16   : > { %953 = vset.pattern.permute.xlu0 %v998_v7 }
  0x17   : > { %304 = vperm.xlu2 %941, %v266_v5   ;;  %294 = vperm.xlu1 %940, %v1066_v6  }
  0x18   : > { %553 = vperm.xlu0 %953, %v265_v1  }
  0x1f   : > { %372 = vperm.xlu2 %941, %v275_v8   ;;  %314 = vperm.xlu1 %940, %v268_v9  }
  0x20   : > { %958 = vset.pattern.permute.xlu0 %v999_v10 }
  0x21   : > { %409 = vperm.xlu0 %958, %v1066_v6  }
  0x27   : > { %943 = vset.pattern.permute.xlu2 %v999_v10  ;;  %942 = vset.pattern.permute.xlu1 %v999_v10 }
  0x28   : > { %425 = vperm.xlu2 %943, %v268_v9   ;;  %421 = vperm.xlu1 %942, %v267_v0  }
  0x29   : > { %959 = vset.pattern.permute.xlu0 %v997_v4 }
  0x2a   : > { %279 = vperm.xlu0 %959, %v1083_v11  }
  0x30   : > { %946 = vset.pattern.permute.xlu2 %v998_v7  ;;  %945 = vset.pattern.permute.xlu1 %v996_v3 }
  0x31   : > { %561 = vperm.xlu2 %946, %v267_v0   ;;  %495 = vperm.xlu1 %945, %v268_v9  }
  0x32   : > { %284 = vperm.xlu0 %959, %v1090_v12  }
  0x39   : > { %948 = vset.pattern.permute.xlu2 %v997_v4  ;;  %947 = vset.pattern.permute.xlu1 %v998_v7 }
  0x3a   : > { %362 = vperm.xlu2 %948, %v273_v13   ;;  %565 = vperm.xlu1 %947, %v268_v9  }
  0x3b   : > { %309 = vperm.xlu0 %959, %v267_v0  }
  0x42   : > { %950 = vset.pattern.permute.xlu2 %v999_v10  ;;  %949 = vset.pattern.permute.xlu1 %v999_v10 }
  0x43   : > { %377 = vperm.xlu0 %959, %v276_v14   ;;  %417 = vperm.xlu2 %950, %v266_v5  }
  0x44   : > { %413 = vperm.xlu1 %949, %v265_v1  }
  0x4b   : > { %367 = vperm.xlu0 %959, %v274_v15   ;;  %952 = vset.pattern.permute.xlu2 %v996_v3 }
  0x4c   : > { %951 = vset.pattern.permute.xlu1 %v996_v3  ;;  %487 = vperm.xlu2 %952, %v266_v5  }
  0x4d   : > { %483 = vperm.xlu1 %951, %v265_v1  }
  0x53   : > { %342 = vperm.xlu0 %959, %v269_v16  }
  0x54   : > { %955 = vset.pattern.permute.xlu2 %v997_v4 }
  0x55   : > { %954 = vset.pattern.permute.xlu1 %v998_v7  ;;  %352 = vperm.xlu2 %955, %v271_v17  }
  0x56   : > { %557 = vperm.xlu1 %954, %v266_v5  }
  0x5b   : > { %968 = vset.pattern.permute.xlu0 %v996_v3 }
  0x5c   : > { %471 = vperm.xlu0 %968, %v1090_v12  }
  0x5d   : > { %957 = vset.pattern.permute.xlu2 %v999_v10 }
  0x5e   : > { %956 = vset.pattern.permute.xlu1 %v997_v4  ;;  %405 = vperm.xlu2 %957, %v1054_v2  }
  0x5f   : > { %357 = vperm.xlu1 %956, %v272_v18  }
  0x64   : > { %971 = vset.pattern.permute.xlu0 %v998_v7 }
  0x66   : > { %961 = vset.pattern.permute.xlu2 %v996_v3 }
  0x67   : > { %960 = vset.pattern.permute.xlu1 %v996_v3  ;;  %479 = vperm.xlu2 %961, %v1066_v6  }
  0x68   : > { %475 = vperm.xlu1 %960, %v1054_v2  }
  0x69   : > { %v1131_v19 = vpop.permute.xlu2 %299 }
  0x6a   : > { %v333_v38 = vmul.f32 %v1179_v45, %v1131_v19 }
  0x6f   : > { %963 = vset.pattern.permute.xlu2 %v998_v7 }
  0x70   : > { %962 = vset.pattern.permute.xlu1 %v998_v7  ;;  %549 = vperm.xlu2 %963, %v1066_v6  }
  0x71   : > { %545 = vperm.xlu1 %962, %v1054_v2   ;;  %v1137_v20 = vpop.permute.xlu2 %304 }
  0x78   : > { %965 = vset.pattern.permute.xlu2 %v999_v10 }
  0x79   : > { %964 = vset.pattern.permute.xlu1 %v997_v4  ;;  %397 = vperm.xlu2 %965, %v1083_v11   ;;  %v373_v22 = vpop.permute.xlu2 %372 }
  0x7a   : > { %347 = vperm.xlu1 %964, %v270_v21  }
  0x80   : > { %v492_v23 = vpop.permute.xlu0 %491 }
  0x81   : > { %v1145_v24 = vpop.permute.xlu1 %289  ;;  %967 = vset.pattern.permute.xlu2 %v996_v3  ;;  %v516_v63 = vmul.f32 %v1189_v55, %v492_v23  ;;  %v517_v0 = vmul.f32 %v1191_v56, %v492_v23 }
  0x82   : > { %966 = vset.pattern.permute.xlu1 %v999_v10  ;;  %467 = vperm.xlu2 %967, %v1083_v11   ;;  %v426_v25 = vpop.permute.xlu2 %425 }
  0x83   : > { %401 = vperm.xlu1 %966, %v1090_v12   ;;  %v449_v8 = vmul.f32 %v1183_v47, %v426_v25 }
  0x89   : > { %v1151_v26 = vpop.permute.xlu1 %294 }
  0x8a   : > { %v1153_v27 = vpop.permute.xlu0 %553  ;;  %970 = vset.pattern.permute.xlu2 %v998_v7 }
  0x8b   : > { %969 = vset.pattern.permute.xlu1 %v998_v7  ;;  %541 = vperm.xlu2 %970, %v1090_v12   ;;  %v562_v28 = vpop.permute.xlu2 %561  ;;  %v448_v7 = vmul.f32 %v1181_v46, %v426_v25 }
  0x8c   : > { %537 = vperm.xlu1 %969, %v1083_v11   ;;  %v586_v10 = vmul.f32 %v1195_v61, %v562_v28  ;;  %v587_v11 = vmul.f32 %v1197_v62, %v562_v28  ;;  %v332_v28 = vmul.f32 %v1177_v44, %v1131_v19  ;;  %v335_v19 = vmul.f32 %v1179_v45, %v1137_v20 }
  0x91   : > { %v315_v29 = vpop.permute.xlu1 %314 }
  0x92   : > { %v338_v3 = vmul.f32 %v1177_v44, %v315_v29  ;;  %v339_v4 = vmul.f32 %v1179_v45, %v315_v29 }
  0x93   : > { %v1159_v30 = vpop.permute.xlu0 %409 }
  0x94   : > { %v1162_v31 = vpop.permute.xlu2 %362 }
  0x95   : > { %v388_v50 = vadd.f32 %v1162_v31, %v332_v28 }
  0x9a   : > { %v422_v32 = vpop.permute.xlu1 %421 }
  0x9b   : > { %v446_v57 = vmul.f32 %v1181_v46, %v422_v32  ;;  %v447_v58 = vmul.f32 %v1183_v47, %v422_v32 }
  0x9c   : > { %v1167_v33 = vpop.permute.xlu0 %279 }
  0x9d   : > { %v1173_v34 = vpop.permute.xlu2 %417 }
  0xa3   : > { %v496_v35 = vpop.permute.xlu1 %495 }
  0xa4   : > { %v1175_v36 = vpop.permute.xlu0 %284  ;;  %v518_v16 = vmul.f32 %v1189_v55, %v496_v35  ;;  %v519_v17 = vmul.f32 %v1191_v56, %v496_v35 }
  0xa6   : > { %v1185_v48 = vpop.permute.xlu2 %487 }
  0xac   : > { %v566_v49 = vpop.permute.xlu1 %565 }
  0xad   : > { %v310_v52 = vpop.permute.xlu0 %309  ;;  %v588_v25 = vmul.f32 %v1195_v61, %v566_v49  ;;  %v589_v29 = vmul.f32 %v1197_v62, %v566_v49  ;;  %v389_v49 = vadd.f32 %v1162_v31, %v333_v38 }
  0xae   : > { %v336_v53 = vmul.f32 %v1177_v44, %v310_v52  ;;  %v337_v54 = vmul.f32 %v1179_v45, %v310_v52 }
  0xaf   : > { %v1207_v12 = vpop.permute.xlu2 %352 }
  0xb0   : > { %v392_v59 = vadd.f32 %v373_v22, %v336_v53  ;;  %v393_v60 = vadd.f32 %v373_v22, %v337_v54  ;;  %v334_v54 = vmul.f32 %v1177_v44, %v1137_v20  ;;  %v444_v20 = vmul.f32 %v1181_v46, %v1173_v34 }
  0xb2   : > { %v462_v1 = vadd.f32 %v446_v57, %v392_v59  ;;  %v463_v2 = vadd.f32 %v447_v58, %v393_v60 }
  0xb4   : > { %v532_v5 = vadd.f32 %v516_v63, %v462_v1  ;;  %v533_v6 = vadd.f32 %v517_v0, %v463_v2 }
  0xb5   : > { %v378_v9 = vpop.permute.xlu0 %377 }
  0xb6   : > { %v394_v13 = vadd.f32 %v378_v9, %v338_v3  ;;  %v395_v14 = vadd.f32 %v378_v9, %v339_v4  ;;  %v414_v15 = vpop.permute.xlu1 %413  ;;  %v602_v22 = vadd.f32 %v586_v10, %v532_v5  ;;  %v603_v23 = vadd.f32 %v587_v11, %v533_v6 }
  0xb7   : > { %v442_v39 = vmul.f32 %v1181_v46, %v414_v15  ;;  %v443_v35 = vmul.f32 %v1183_v47, %v414_v15  ;;  %v445_v6 = vmul.f32 %v1183_v47, %v1173_v34  ;;  %v582_v11 = vmul.f32 %v1195_v61, %v1153_v27 }
  0xb8   : > { %v464_v18 = vadd.f32 %v448_v7, %v394_v13  ;;  %v465_v21 = vadd.f32 %v449_v8, %v395_v14  ;;  %v618_v42 = vmul.f32 0.2, %v602_v22  ;;  %v619_v43 = vmul.f32 0.2, %v603_v23  ;;  %v1225_v60 = vpop.permute.xlu2 %405 }
  0xb9   : > { %v458_v57 = vadd.f32 %v442_v39, %v388_v50  ;;  %v459_v58 = vadd.f32 %v443_v35, %v389_v49  ;;  %v583_v13 = vmul.f32 %v1197_v62, %v1153_v27  ;;  %v514_v14 = vmul.f32 %v1189_v55, %v1185_v48 }
  0xba   : > { %v534_v32 = vadd.f32 %v518_v16, %v464_v18  ;;  %v535_v37 = vadd.f32 %v519_v17, %v465_v21  ;;  %v1229_v1 = vmax.f32 %v602_v22, %v618_v42  ;;  %v1231_v31 = vmax.f32 %v603_v23, %v619_v43 }
  0xbb   : > { %v515_v34 = vmul.f32 %v1191_v56, %v1185_v48  ;;  %v330_v50 = vmul.f32 %v1177_v44, %v1151_v26  ;;  %v331_v49 = vmul.f32 %v1179_v45, %v1151_v26 }
  0xbc   : > { %v604_v40 = vadd.f32 %v588_v25, %v534_v32  ;;  %v605_v41 = vadd.f32 %v589_v29, %v535_v37 }
  0xbd   : > { %v368_v51 = vpop.permute.xlu0 %367 }
  0xbe   : > { %v620_v52 = vmul.f32 0.2, %v604_v40  ;;  %v621_v53 = vmul.f32 0.2, %v605_v41  ;;  %v390_v2 = vadd.f32 %v368_v51, %v334_v54  ;;  %v391_v3 = vadd.f32 %v368_v51, %v335_v19 }
  0xbf   : > { %v484_v59 = vpop.permute.xlu1 %483  ;;  %v440_v51 = vmul.f32 %v1181_v46, %v1159_v30 }
  0xc0   : > { %v512_v63 = vmul.f32 %v1189_v55, %v484_v59  ;;  %v513_v0 = vmul.f32 %v1191_v56, %v484_v59  ;;  %v636_v4 = vmax.f32 %v604_v40, %v620_v52  ;;  %v637_v5 = vmax.f32 %v605_v41, %v621_v53 }
  0xc1   : > { %v460_v16 = vadd.f32 %v444_v20, %v390_v2  ;;  %v461_v17 = vadd.f32 %v445_v6, %v391_v3  ;;  %v480_v21 = vpop.permute.xlu2 %479  ;;  %v441_v52 = vmul.f32 %v1183_v47, %v1159_v30 }
  0xc2   : > { %v528_v7 = vadd.f32 %v512_v63, %v458_v57  ;;  %v529_v8 = vadd.f32 %v513_v0, %v459_v58  ;;  %v1238_v9 = vpack.c.bf16 %v636_v4, %v1229_v1  ;;  %v1241_v10 = vpack.c.bf16 %v637_v5, %v1231_v31 }
  0xc3   : > { %v1249_v15 = vadd.f32 %v637_v5, %v636_v4  ;;  %v530_v23 = vadd.f32 %v514_v14, %v460_v16  ;;  %v531_v25 = vadd.f32 %v515_v34, %v461_v17  ;;  %v510_v58 = vmul.f32 %v1189_v55, %v480_v21 }
  0xc4   : > { %650 = vmatpush.bf16.xpose.msra.mxu0 %v1238_v9  ;;  %904 = vmatpush.bf16.xpose.msra.mxu2 %v1238_v9  ;;  %v598_v18 = vadd.f32 %v582_v11, %v528_v7  ;;  %v599_v27 = vadd.f32 %v583_v13, %v529_v8  ;;  %v511_v59 = vmul.f32 %v1191_v56, %v480_v21 }
  0xc5   : > { %679 = vmatpush.bf16.xpose.msra.mxu1 %v1241_v10  ;;  %908 = vmatpush.bf16.xpose.msra.mxu3 %v1241_v10  ;;  %v328_v16 = vmul.f32 %v1177_v44, %v1145_v24  ;;  %v329_v17 = vmul.f32 %v1179_v45, %v1145_v24 }
  0xc6   : > { %v614_v32 = vmul.f32 0.2, %v598_v18  ;;  %v615_v37 = vmul.f32 0.2, %v599_v27 }
  0xc8   : > { %v558_v22 = vpop.permute.xlu1 %557  ;;  %v1259_v42 = vmax.f32 %v598_v18, %v614_v32  ;;  %v1261_v43 = vmax.f32 %v599_v27, %v615_v37  ;;  %v438_v18 = vmul.f32 %v1181_v46, %v1225_v60  ;;  %v439_v27 = vmul.f32 %v1183_v47, %v1225_v60 }
  0xc9   : > { %v584_v29 = vmul.f32 %v1195_v61, %v558_v22  ;;  %v585_v48 = vmul.f32 %v1197_v62, %v558_v22  ;;  %v384_v22 = vadd.f32 %v1207_v12, %v328_v16 }
  0xca   : > { %v550_v26 = vpop.permute.xlu2 %549 }
  0xcb   : > { %v600_v28 = vadd.f32 %v584_v29, %v530_v23  ;;  %v601_v38 = vadd.f32 %v585_v48, %v531_v25  ;;  %v580_v2 = vmul.f32 %v1195_v61, %v550_v26  ;;  %v581_v30 = vmul.f32 %v1197_v62, %v550_v26 }
  0xcc   : > { %v385_v23 = vadd.f32 %v1207_v12, %v329_v17  ;;  %v454_v48 = vadd.f32 %v438_v18, %v384_v22 }
  0xcd   : > { %v616_v39 = vmul.f32 0.2, %v600_v28  ;;  %v617_v35 = vmul.f32 0.2, %v601_v38 }
  0xce   : > { %v455_v32 = vadd.f32 %v439_v27, %v385_v23 }
  0xcf   : > { %v632_v40 = vmax.f32 %v600_v28, %v616_v39  ;;  %v633_v41 = vmax.f32 %v601_v38, %v617_v35 }
  0xd1   : > { %v358_v53 = vpop.permute.xlu1 %357  ;;  %v1272_v54 = vpack.c.bf16 %v632_v40, %v1259_v42  ;;  %v1275_v19 = vpack.c.bf16 %v633_v41, %v1261_v43  ;;  %v1277_v57 = vadd.f32 %v633_v41, %v632_v40 }
  0xd2   : > { %v386_v63 = vadd.f32 %v358_v53, %v330_v50  ;;  %v387_v0 = vadd.f32 %v358_v53, %v331_v49  ;;  %v343_v49 = vpop.permute.xlu0 %342 }
  0xd3   : > { %651 = vmatpush.bf16.xpose.msra.mxu0 %v1272_v54  ;;  %905 = vmatpush.bf16.xpose.msra.mxu2 %v1272_v54  ;;  %v398_v37 = vpop.permute.xlu2 %397 }
  0xd4   : > { %v456_v3 = vadd.f32 %v440_v51, %v386_v63  ;;  %v457_v4 = vadd.f32 %v441_v52, %v387_v0  ;;  %680 = vmatpush.bf16.xpose.msra.mxu1 %v1275_v19  ;;  %909 = vmatpush.bf16.xpose.msra.mxu3 %v1275_v19  ;;  %v326_v0 = vmul.f32 %v1177_v44, %v1175_v36 }
  0xd5   : > { %v434_v16 = vmul.f32 %v1181_v46, %v398_v37  ;;  %v435_v17 = vmul.f32 %v1183_v47, %v398_v37 }
  0xd6   : > { %v526_v5 = vadd.f32 %v510_v58, %v456_v3  ;;  %v527_v20 = vadd.f32 %v511_v59, %v457_v4  ;;  %v731_v3 = vadd.f32 %v1231_v31, %v1229_v1 }
  0xd8   : > { %v596_v6 = vadd.f32 %v580_v2, %v526_v5  ;;  %v597_v7 = vadd.f32 %v581_v30, %v527_v20  ;;  %v327_v2 = vmul.f32 %v1179_v45, %v1175_v36  ;;  %v325_v36 = vmul.f32 %v1179_v45, %v1167_v33 }
  0xda   : > { %v476_v8 = vpop.permute.xlu1 %475  ;;  %v613_v11 = vmul.f32 0.2, %v597_v7  ;;  %v612_v13 = vmul.f32 0.2, %v596_v6  ;;  %v472_v63 = vpop.permute.xlu0 %471  ;;  %v381_v23 = vadd.f32 %v343_v49, %v325_v36 }
  0xdb   : > { %v508_v25 = vmul.f32 %v1189_v55, %v476_v8  ;;  %v509_v29 = vmul.f32 %v1191_v56, %v476_v8  ;;  %v506_v4 = vmul.f32 %v1189_v55, %v472_v63  ;;  %v507_v5 = vmul.f32 %v1191_v56, %v472_v63 }
  0xdc   : > { %v629_v14 = vmax.f32 %v597_v7, %v613_v11  ;;  %v628_v34 = vmax.f32 %v596_v6, %v612_v13  ;;  %v468_v26 = vpop.permute.xlu2 %467  ;;  %v324_v13 = vmul.f32 %v1177_v44, %v1167_v33 }
  0xdd   : > { %v524_v28 = vadd.f32 %v508_v25, %v454_v48  ;;  %v525_v38 = vadd.f32 %v509_v29, %v455_v32  ;;  %v504_v44 = vmul.f32 %v1189_v55, %v468_v26  ;;  %v505_v25 = vmul.f32 %v1191_v56, %v468_v26 }
  0xde   : > { %v1295_v21 = vadd.f32 %v629_v14, %v628_v34  ;;  %v380_v22 = vadd.f32 %v343_v49, %v324_v13  ;;  %v451_v48 = vadd.f32 %v435_v17, %v381_v23 }
  0xe0   : > { %v450_v29 = vadd.f32 %v434_v16, %v380_v22 }
  0xe3   : > { %v546_v24 = vpop.permute.xlu1 %545 }
  0xe4   : > { %v578_v39 = vmul.f32 %v1195_v61, %v546_v24  ;;  %v579_v60 = vmul.f32 %v1197_v62, %v546_v24 }
  0xe5   : > { %v542_v20 = vpop.permute.xlu2 %541 }
  0xe6   : > { %v594_v35 = vadd.f32 %v578_v39, %v524_v28  ;;  %v595_v40 = vadd.f32 %v579_v60, %v525_v38  ;;  %v576_v31 = vmul.f32 %v1195_v61, %v542_v20  ;;  %v520_v38 = vadd.f32 %v504_v44, %v450_v29 }
  0xe7   : > { %v521_v39 = vadd.f32 %v505_v25, %v451_v48 }
  0xe8   : > { %v611_v41 = vmul.f32 0.2, %v595_v40  ;;  %v610_v50 = vmul.f32 0.2, %v594_v35 }
  0xea   : > { %v627_v12 = vmax.f32 %v595_v40, %v611_v41  ;;  %v626_v51 = vmax.f32 %v594_v35, %v610_v50 }
  0xec   : > { %v348_v52 = vpop.permute.xlu1 %347  ;;  %v1303_v53 = vpack.c.bf16 %v629_v14, %v627_v12  ;;  %v719_v58 = vadd.f32 %v627_v12, %v626_v51  ;;  %v1305_v59 = vpack.c.bf16 %v628_v34, %v626_v51  ;;  %v577_v34 = vmul.f32 %v1197_v62, %v542_v20 }
  0xed   : > { %v382_v6 = vadd.f32 %v348_v52, %v326_v0  ;;  %v383_v7 = vadd.f32 %v348_v52, %v327_v2 }
  0xee   : > { %681 = vmatpush.bf16.xpose.msra.mxu1 %v1303_v53  ;;  %910 = vmatpush.bf16.xpose.msra.mxu3 %v1303_v53 }
  0xef   : > { %720 = vadd.xlane.f32.xlu0 %v719_v58  ;;  %652 = vmatpush.bf16.xpose.msra.mxu0 %v1305_v59 }
  0xf0   : > { %906 = vmatpush.bf16.xpose.msra.mxu2 %v1305_v59 }
  0xf5   : > { %v402_v30 = vpop.permute.xlu1 %401 }
  0xf6   : > { %v436_v8 = vmul.f32 %v1181_v46, %v402_v30  ;;  %v437_v11 = vmul.f32 %v1183_v47, %v402_v30 }
  0xf7   : > { %732 = vadd.xlane.f32.xlu0 %v731_v3 }
  0xf8   : > { %v452_v14 = vadd.f32 %v436_v8, %v382_v6  ;;  %v453_v1 = vadd.f32 %v437_v11, %v383_v7 }
  0xfa   : > { %v522_v18 = vadd.f32 %v506_v4, %v452_v14  ;;  %v523_v27 = vadd.f32 %v507_v5, %v453_v1 }
  0xfc   : > { %v592_v33 = vadd.f32 %v576_v31, %v522_v18  ;;  %v593_v45 = vadd.f32 %v577_v34, %v523_v27 }
  0xfe   : > { %v538_v32 = vpop.permute.xlu1 %537  ;;  %v608_v24 = vmul.f32 0.2, %v592_v33  ;;  %v609_v28 = vmul.f32 0.2, %v593_v45 }
  0xff   : > { %v574_v46 = vmul.f32 %v1195_v61, %v538_v32  ;;  %v575_v47 = vmul.f32 %v1197_v62, %v538_v32  ;;  %v725_v61 = vadd.f32 %v1261_v43, %v1259_v42 }
 0x100   : > { %v624_v37 = vmax.f32 %v592_v33, %v608_v24  ;;  %v625_v60 = vmax.f32 %v593_v45, %v609_v28 }
 0x101   : > { %v590_v35 = vadd.f32 %v574_v46, %v520_v38  ;;  %v591_v40 = vadd.f32 %v575_v47, %v521_v39 }
 0x102   : > { %v716_v55 = vadd.f32 %v625_v60, %v624_v37 }
 0x103   : > { %v607_v41 = vmul.f32 0.2, %v591_v40  ;;  %v606_v56 = vmul.f32 0.2, %v590_v35 }
 0x104   : > { %717 = vadd.xlane.f32.xlu2 %v716_v55 }
 0x105   : > { %v623_v50 = vmax.f32 %v591_v40, %v607_v41  ;;  %v622_v49 = vmax.f32 %v590_v35, %v606_v56 }
 0x107   : > { %v639_v12 = vpack.c.bf16 %v625_v60, %v623_v50  ;;  %v713_v51 = vadd.f32 %v623_v50, %v622_v49  ;;  %v638_v52 = vpack.c.bf16 %v624_v37, %v622_v49 }
 0x109   : > { %682 = vmatpush.bf16.xpose.msra.mxu1 %v639_v12  ;;  %911 = vmatpush.bf16.xpose.msra.mxu3 %v639_v12 }
 0x10a   : > { %714 = vadd.xlane.f32.xlu1 %v713_v51  ;;  %653 = vmatpush.bf16.xpose.msra.mxu0 %v638_v52 }
 0x10b   : > { %907 = vmatpush.bf16.xpose.msra.mxu2 %v638_v52 }
 0x10c   : > { %723 = vadd.xlane.f32.xlu2 %v1295_v21 }
 0x110   : > { %683 = vmatmul.bf16.vlgmr.msra.gmra.mxu1 %v639_v12  ;;  %693 = vmatmul.bf16.vlgmr.msra.gmra.mxu3 %v1275_v19 }
 0x111   : > { %654 = vmatmul.bf16.vlgmr.msra.gmra.mxu0 %v638_v52 }
 0x112   : > { %664 = vmatmul.bf16.vlgmr.msra.gmra.mxu2 %v1272_v54  ;;  %726 = vadd.xlane.f32.xlu1 %v725_v61 }
 0x114   : > { %729 = vadd.xlane.f32.xlu2 %v1277_v57 }
 0x11a   : > { %735 = vadd.xlane.f32.xlu1 %v1249_v15 }
 0x120   : > { %688 = vmatmul.bf16.gmra.mxu1 %v1303_v53  ;;  %698 = vmatmul.bf16.gmra.mxu3 %v1241_v10 }
 0x121   : > { %659 = vmatmul.bf16.gmra.mxu0 %v1305_v59 }
 0x122   : > { %669 = vmatmul.bf16.gmra.mxu2 %v1238_v9 }
 0x162   : > { %v721_v62 = vpop.xlane.xlu0 %720 }
 0x163   : > { %740 = vst.msk [vmem:[%s258_s10 + $0x10] sm:$0xff] %vm737_vm0, %v721_v62 }
 0x16a   : > { %v733_v42 = vpop.xlane.xlu0 %732 }
 0x16b   : > { %744 = vst.msk [vmem:[%s258_s10 + $0x30] sm:$0xff] %vm737_vm0, %v733_v42 }
 0x177   : > { %v718_v15 = vpop.xlane.xlu2 %717 }
 0x178   : > { %739 = vst.msk [vmem:[%s258_s10 + $0x8] sm:$0xff] %vm737_vm0, %v718_v15 }
 0x17d   : > { %v715_v10 = vpop.xlane.xlu1 %714 }
 0x17e   : > { %738 = vst.msk [vmem:[%s258_s10] sm:$0xff] %vm737_vm0, %v715_v10 }
 0x17f   : > { %v724_v43 = vpop.xlane.xlu2 %723 }
 0x180   : > { %741 = vst.msk [vmem:[%s258_s10 + $0x18] sm:$0xff] %vm737_vm0, %v724_v43 }
 0x185   : > { %v727_v9 = vpop.xlane.xlu1 %726 }
 0x186   : > { %742 = vst.msk [vmem:[%s258_s10 + $0x20] sm:$0xff] %vm737_vm0, %v727_v9 }
 0x187   : > { %v730_v54 = vpop.xlane.xlu2 %729 }
 0x188   : > { %743 = vst.msk [vmem:[%s258_s10 + $0x28] sm:$0xff] %vm737_vm0, %v730_v54 }
 0x18d   : > { %v736_v19 = vpop.xlane.xlu1 %735  ;;  %v684_v57 = vpop.f32.mrf.mxu1 }
 0x18e   : > { %745 = vst.msk [vmem:[%s258_s10 + $0x38] sm:$0xff] %vm737_vm0, %v736_v19  ;;  %v655_v21 = vpop.f32.mrf.mxu0 }
 0x18f   : > { %v685_v53 = vadd.f32 %v684_v57, %v655_v21 }
 0x191   : > { %705 = vst.msk [vmem:[%s1358_s12] sm:$0xff] %vm704_vm1, %v685_v53 }
 0x193   : > { %v694_v58 = vpop.f32.mrf.mxu3 }
 0x195   : > { %v665_v59 = vpop.f32.mrf.mxu2  ;;  %v686_v26 = vpop.f32.mrf.mxu1 }
 0x196   : > { %v695_v63 = vadd.f32 %v694_v58, %v665_v59  ;;  %v657_v0 = vpop.f32.mrf.mxu0 }
 0x197   : > { %v687_v2 = vadd.f32 %v686_v26, %v657_v0 }
 0x198   : > { %709 = vst.msk [vmem:[%s1358_s12 + $0x20] sm:$0xff] %vm704_vm1, %v695_v63 }
 0x199   : > { %706 = vst.msk [vmem:[%s1358_s12 + $0x8] sm:$0xff] %vm704_vm1, %v687_v2 }
 0x19b   : > { %v696_v30 = vpop.f32.mrf.mxu3 }
 0x19d   : > { %v667_v3 = vpop.f32.mrf.mxu2  ;;  %v689_v4 = vpop.f32.mrf.mxu1 }
 0x19e   : > { %v697_v5 = vadd.f32 %v696_v30, %v667_v3  ;;  %v660_v20 = vpop.f32.mrf.mxu0 }
 0x19f   : > { %v690_v6 = vadd.f32 %v689_v4, %v660_v20 }
 0x1a0   : > { %710 = vst.msk [vmem:[%s1358_s12 + $0x28] sm:$0xff] %vm704_vm1, %v697_v5 }
 0x1a1   : > { %707 = vst.msk [vmem:[%s1358_s12 + $0x10] sm:$0xff] %vm704_vm1, %v690_v6 }
 0x1a3   : > { %v699_v7 = vpop.f32.mrf.mxu3 }
 0x1a5   : > { %v670_v8 = vpop.f32.mrf.mxu2  ;;  %v691_v11 = vpop.f32.mrf.mxu1 }
 0x1a6   : > { %v700_v13 = vadd.f32 %v699_v7, %v670_v8  ;;  %v662_v36 = vpop.f32.mrf.mxu0 }
 0x1a7   : > { %v692_v14 = vadd.f32 %v691_v11, %v662_v36 }
 0x1a8   : > { %711 = vst.msk [vmem:[%s1358_s12 + $0x30] sm:$0xff] %vm704_vm1, %v700_v13 }
 0x1a9   : > { %708 = vst.msk [vmem:[%s1358_s12 + $0x18] sm:$0xff] %vm704_vm1, %v692_v14 }
 0x1ab   : > { %v701_v1 = vpop.f32.mrf.mxu3 }
 0x1ad   : > { %v672_v31 = vpop.f32.mrf.mxu2 }
 0x1ae   : > { %v702_v34 = vadd.f32 %v701_v1, %v672_v31 }
 0x1b0   : > { %712 = vst.msk [vmem:[%s1358_s12 + $0x38] sm:$0xff] %vm704_vm1, %v702_v34 }
 0x1b1 PF: > { %s15_s17 = sadd.s32 1, %s994_s17   ;;  %s1391_s15 = smov %s990_s16 }
 0x1b2   : > { %p12_p5 = scmp.ge.s32.totalorder %s15_s17, 4   ;;  %s1392_s16 = smov %s1394_s18 }
 0x1b4   :  { %14 = sbr.rel (!%p12_p5) target bundleno = 2 (0x2), region = 74 }

// kernel: pixel_discriminator_forward.3
= control target key start
LH: loop header
LB: loop body
LE: loop exit
PB: predicated region body
PF: predicated region fallthrough
CT: control target
= control target key end

     0   :  { %s1346_s21 = smov 0   ;;  %s1348_s22 = smov 0   ;;  %s1761_s0 = inlined_call_operand.vmem [shape: f32[2,4,256], index: 0, kind: input, shape index: {}]   ;;  %s1762_s1 = inlined_call_operand.vmem [shape: f32[64,4], index: 1, kind: input, shape index: {}]   ;;  %s1763_s2 = inlined_call_operand.vmem [shape: f32[64,1], index: 2, kind: input, shape index: {}]   ;;  %s1764_s3 = inlined_call_operand.vmem [shape: bf16[128,64], index: 3, kind: input, shape index: {}]   ;;  %s1765_s4 = inlined_call_operand.vmem [shape: f32[128,1], index: 4, kind: input, shape index: {}]   ;;  %s1766_s5 = inlined_call_operand.vmem [shape: bf16[8,128], index: 5, kind: input, shape index: {}]   ;;  %s1767_s6 = inlined_call_operand.vmem [shape: f32[2,1,256], index: 6, kind: output, shape index: {}]  }
   0x1   :  { %s1350_s23 = smov 0  }
   0x2 LB: > { %s28_s24 = sadd.s32 1, %s1301_s22  ;;  %p1154_p0 = scmp.ge.s32.totalorder %s1305_s23, 1  ;;  %s1305_s23 = sphi %s1350_s23, %s16_s23   ;;  %s1301_s22 = sphi %s1348_s22, %s1769_s22   ;;  %s1297_s21 = sphi %s1346_s21, %s1768_s21  }
   0x3   : > { %p30_p1 = scmp.ge.s32.totalorder %s28_s24, 2  ;;  %p233_p2 = scmp.lt.s32.totalorder %s1305_s23, 3 }
   0x5   : > { %s1771_s24 = smov (%p30_p1, %s28_s24), 0  ;;  %p234_p3 = pnand %p1154_p0, %p233_p2 }
   0x6   : > { %p271_p4 = scmp.lt.s32.totalorder (!%p234_p3), %s1297_s21, 1 }
   0x7   : > { %237 = sbr.rel (%p234_p3) target bundleno = 631 (0x277), region = 44 }
   0xc   : > { %v305_v0 = vld [vmem:[%s1763_s2 + $0x30] sm:$0xff]  ;;  %v1307_v2 = vmov 0   ;;  %v1308_v3 = vmov 1   ;;  %v306_v4 = vld [vmem:[%s1763_s2 + $0x38] sm:$0xff]  ;;  %v296_v6 = vld [vmem:[%s1762_s1 + $0x28] sm:$0xff]  ;;  %v1309_v8 = vmov 2  }
   0xd   : > { %v297_v1 = vld [vmem:[%s1762_s1 + $0x30] sm:$0xff]  ;;  %1254 = vset.pattern.permute.xlu1 %v1307_v2  ;;  %1253 = vset.pattern.permute.xlu0 %v1307_v2  ;;  %v298_v5 = vld [vmem:[%s1762_s1 + $0x38] sm:$0xff]  ;;  %v295_v7 = vld [vmem:[%s1762_s1 + $0x20] sm:$0xff]  ;;  %v1310_v12 = vmov 3   ;;  %s1773_s21 = smov (!%p271_p4, %s1297_s21), 1  ;;  %vm828_vm0 = vcmask 523264  }
   0xe   : > { %402 = vperm.xlu1 %1254, %v305_v0   ;;  %339 = vperm.xlu0 %1253, %v297_v1   ;;  %v303_v9 = vld [vmem:[%s1763_s2 + $0x20] sm:$0xff]  ;;  %v304_v10 = vld [vmem:[%s1763_s2 + $0x28] sm:$0xff]  ;;  %v294_v11 = vld [vmem:[%s1762_s1 + $0x18] sm:$0xff]  ;;  %s1208_s13 = sshll.u32 %s1773_s21, 3  ;;  %s1157_s7 = sshll.u32 %s1773_s21, 1  ;;  %vm1061_vm1 = vcmask 1040384  }
   0xf   : > { %1255 = vset.pattern.permute.xlu2 %v1308_v3  ;;  %v293_v13 = vld [vmem:[%s1762_s1 + $0x10] sm:$0xff]  ;;  %v302_v15 = vld [vmem:[%s1763_s2 + $0x18] sm:$0xff]  ;;  %v292_v16 = vld [vmem:[%s1762_s1 + $0x8] sm:$0xff]  ;;  %s278_s16 = scalar_lea.vmem %s1761_s0, %s1208_s13  ;;  %s287_s10 = scalar_lea.vmem %s1767_s6, %s1157_s7 }
  0x10   : > { %451 = vperm.xlu2 %1255, %v297_v1   ;;  %v301_v14 = vld [vmem:[%s1763_s2 + $0x10] sm:$0xff]  ;;  %v291_v17 = vld [vmem:[%s1762_s1] sm:$0xff]  ;;  %v300_v20 = vld [vmem:[%s1763_s2 + $0x8] sm:$0xff] }
  0x11   : > { %v299_v18 = vld [vmem:[%s1763_s2] sm:$0xff] }
  0x12   : > { %v290_v33 = vld [vmem:[%s278_s16] sm:$0xff] }
  0x13   : > { %v348_v34 = vperm.slane %v290_v33, 0  ;;  %v349_v35 = vperm.slane %v290_v33, 4  ;;  %v458_v39 = vperm.slane %v290_v33, 1  ;;  %v459_v40 = vperm.slane %v290_v33, 5 }
  0x14   : > { %v528_v43 = vperm.slane %v290_v33, 2  ;;  %v529_v44 = vperm.slane %v290_v33, 6  ;;  %v598_v47 = vperm.slane %v290_v33, 3  ;;  %v599_v48 = vperm.slane %v290_v33, 7 }
  0x15   : > { %v1467_v41 = vperm.slane %v348_v34, 0  ;;  %v1469_v42 = vperm.slane %v349_v35, 0  ;;  %v1473_v49 = vperm.slane %v458_v39, 1  ;;  %v1475_v50 = vperm.slane %v459_v40, 1 }
  0x16   : > { %407 = vperm.xlu1 %1254, %v306_v4   ;;  %344 = vperm.xlu0 %1253, %v298_v5   ;;  %v1479_v53 = vperm.slane %v528_v43, 2  ;;  %v1481_v54 = vperm.slane %v529_v44, 2  ;;  %v1485_v58 = vperm.slane %v598_v47, 3  ;;  %v1487_v59 = vperm.slane %v599_v48, 3 }
  0x18   : > { %455 = vperm.xlu2 %1255, %v298_v5  }
  0x1e   : > { %334 = vperm.xlu1 %1254, %v296_v6   ;;  %329 = vperm.xlu0 %1253, %v295_v7  }
  0x20   : > { %1256 = vset.pattern.permute.xlu2 %v1309_v8 }
  0x21   : > { %521 = vperm.xlu2 %1256, %v297_v1  }
  0x26   : > { %392 = vperm.xlu1 %1254, %v303_v9   ;;  %1257 = vset.pattern.permute.xlu0 %v1309_v8 }
  0x27   : > { %525 = vperm.xlu0 %1257, %v298_v5  }
  0x29   : > { %1258 = vset.pattern.permute.xlu2 %v1307_v2 }
  0x2a   : > { %397 = vperm.xlu2 %1258, %v304_v10  }
  0x2e   : > { %1259 = vset.pattern.permute.xlu1 %v1308_v3 }
  0x2f   : > { %443 = vperm.xlu1 %1259, %v295_v7   ;;  %517 = vperm.xlu0 %1257, %v296_v6  }
  0x32   : > { %1260 = vset.pattern.permute.xlu2 %v1308_v3 }
  0x33   : > { %447 = vperm.xlu2 %1260, %v296_v6  }
  0x37   : > { %1261 = vset.pattern.permute.xlu1 %v1310_v12  ;;  %509 = vperm.xlu0 %1257, %v294_v11  }
  0x38   : > { %595 = vperm.xlu1 %1261, %v298_v5  }
  0x3b   : > { %1262 = vset.pattern.permute.xlu2 %v1307_v2 }
  0x3c   : > { %319 = vperm.xlu2 %1262, %v293_v13  }
  0x3f   : > { %1272 = vset.pattern.permute.xlu0 %v1310_v12 }
  0x40   : > { %1263 = vset.pattern.permute.xlu1 %v1307_v2  ;;  %591 = vperm.xlu0 %1272, %v297_v1  }
  0x41   : > { %324 = vperm.xlu1 %1263, %v294_v11  }
  0x44   : > { %1264 = vset.pattern.permute.xlu2 %v1309_v8 }
  0x45   : > { %513 = vperm.xlu2 %1264, %v295_v7  }
  0x48   : > { %583 = vperm.xlu0 %1272, %v295_v7  }
  0x49   : > { %382 = vperm.xlu1 %1263, %v301_v14  }
  0x4d   : > { %1265 = vset.pattern.permute.xlu2 %v1307_v2 }
  0x4e   : > { %387 = vperm.xlu2 %1265, %v302_v15  }
  0x50   : > { %575 = vperm.xlu0 %1272, %v293_v13  }
  0x51   : > { %1266 = vset.pattern.permute.xlu1 %v1308_v3 }
  0x52   : > { %435 = vperm.xlu1 %1266, %v293_v13  }
  0x56   : > { %1267 = vset.pattern.permute.xlu2 %v1308_v3 }
  0x57   : > { %439 = vperm.xlu2 %1267, %v294_v11  }
  0x58   : > { %571 = vperm.xlu0 %1272, %v292_v16  }
  0x5a   : > { %1268 = vset.pattern.permute.xlu1 %v1310_v12 }
  0x5b   : > { %587 = vperm.xlu1 %1268, %v296_v6  }
  0x5f   : > { %1269 = vset.pattern.permute.xlu2 %v1307_v2 }
  0x60   : > { %309 = vperm.xlu2 %1269, %v291_v17   ;;  %1282 = vset.pattern.permute.xlu0 %v1307_v2 }
  0x63   : > { %1270 = vset.pattern.permute.xlu1 %v1307_v2 }
  0x64   : > { %314 = vperm.xlu1 %1270, %v292_v16  }
  0x68   : > { %1271 = vset.pattern.permute.xlu2 %v1309_v8 }
  0x69   : > { %505 = vperm.xlu2 %1271, %v293_v13  }
  0x6a   : > { %v1429_v19 = vpop.permute.xlu2 %451 }
  0x6b   : > { %v476_v4 = vmul.f32 %v1473_v49, %v1429_v19  ;;  %v477_v5 = vmul.f32 %v1475_v50, %v1429_v19 }
  0x6c   : > { %372 = vperm.xlu1 %1270, %v299_v18  }
  0x71   : > { %1273 = vset.pattern.permute.xlu2 %v1307_v2 }
  0x72   : > { %377 = vperm.xlu2 %1273, %v300_v20   ;;  %v456_v21 = vpop.permute.xlu2 %455 }
  0x73   : > { %v478_v61 = vmul.f32 %v1473_v49, %v456_v21  ;;  %v479_v62 = vmul.f32 %v1475_v50, %v456_v21 }
  0x74   : > { %1274 = vset.pattern.permute.xlu1 %v1308_v3 }
  0x75   : > { %427 = vperm.xlu1 %1274, %v291_v17  }
  0x7a   : > { %1275 = vset.pattern.permute.xlu2 %v1308_v3 }
  0x7b   : > { %431 = vperm.xlu2 %1275, %v292_v16   ;;  %v1437_v24 = vpop.permute.xlu2 %521 }
  0x7c   : > { %v546_v10 = vmul.f32 %v1479_v53, %v1437_v24 }
  0x7d   : > { %1276 = vset.pattern.permute.xlu1 %v1310_v12 }
  0x7e   : > { %579 = vperm.xlu1 %1276, %v294_v11   ;;  %v547_v11 = vmul.f32 %v1481_v54, %v1437_v24 }
  0x80   : > { %v403_v22 = vpop.permute.xlu1 %402  ;;  %v340_v23 = vpop.permute.xlu0 %339 }
  0x81   : > { %v366_v51 = vmul.f32 %v1467_v41, %v340_v23  ;;  %v367_v52 = vmul.f32 %v1469_v42, %v340_v23 }
  0x83   : > { %1277 = vset.pattern.permute.xlu2 %v1309_v8  ;;  %v422_v0 = vadd.f32 %v403_v22, %v366_v51  ;;  %v423_v1 = vadd.f32 %v403_v22, %v367_v52 }
  0x84   : > { %497 = vperm.xlu2 %1277, %v291_v17   ;;  %v1441_v27 = vpop.permute.xlu2 %397 }
  0x85   : > { %v493_v13 = vadd.f32 %v477_v5, %v423_v1 }
  0x86   : > { %1278 = vset.pattern.permute.xlu1 %v1309_v8 }
  0x87   : > { %501 = vperm.xlu1 %1278, %v292_v16   ;;  %v563_v21 = vadd.f32 %v547_v11, %v493_v13 }
  0x88   : > { %v408_v25 = vpop.permute.xlu1 %407  ;;  %v345_v26 = vpop.permute.xlu0 %344 }
  0x89   : > { %v368_v45 = vmul.f32 %v1467_v41, %v345_v26  ;;  %v369_v46 = vmul.f32 %v1469_v42, %v345_v26 }
  0x8b   : > { %v424_v55 = vadd.f32 %v408_v25, %v368_v45  ;;  %v425_v56 = vadd.f32 %v408_v25, %v369_v46 }
  0x8c   : > { %1279 = vset.pattern.permute.xlu2 %v1310_v12  ;;  %v492_v12 = vadd.f32 %v476_v4, %v422_v0 }
  0x8d   : > { %567 = vperm.xlu2 %1279, %v291_v17   ;;  %v1452_v30 = vpop.permute.xlu2 %447  ;;  %v494_v6 = vadd.f32 %v478_v61, %v424_v55  ;;  %v495_v7 = vadd.f32 %v479_v62, %v425_v56 }
  0x8e   : > { %v562_v20 = vadd.f32 %v546_v10, %v492_v12 }
  0x8f   : > { %1280 = vset.pattern.permute.xlu1 %v1307_v2 }
  0x90   : > { %v1445_v28 = vpop.permute.xlu1 %334  ;;  %v1447_v29 = vpop.permute.xlu0 %329 }
  0x91   : > { %v362_v51 = vmul.f32 %v1467_v41, %v1447_v29  ;;  %v363_v52 = vmul.f32 %v1469_v42, %v1447_v29  ;;  %v364_v61 = vmul.f32 %v1467_v41, %v1445_v28  ;;  %v365_v62 = vmul.f32 %v1469_v42, %v1445_v28 }
  0x92   : > { %v475_v28 = vmul.f32 %v1475_v50, %v1452_v30 }
  0x95   : > { %1281 = vset.pattern.permute.xlu2 %v1307_v2 }
  0x96   : > { %v1461_v36 = vpop.permute.xlu2 %319 }
  0x98   : > { %v1456_v31 = vpop.permute.xlu1 %392 }
  0x99   : > { %v526_v32 = vpop.permute.xlu0 %525  ;;  %v419_v0 = vadd.f32 %v1456_v31, %v363_v52  ;;  %v703_v52 = vld [vmem:[%s1765_s4 + $0x58] sm:$0xff] }
  0x9a   : > { %v548_v2 = vmul.f32 %v1479_v53, %v526_v32  ;;  %v549_v3 = vmul.f32 %v1481_v54, %v526_v32 }
  0x9c   : > { %v564_v14 = vadd.f32 %v548_v2, %v494_v6  ;;  %v565_v15 = vadd.f32 %v549_v3, %v495_v7  ;;  %v474_v6 = vmul.f32 %v1473_v49, %v1452_v30  ;;  %v421_v7 = vadd.f32 %v1441_v27, %v365_v62 }
  0x9d   : > { %v358_v62 = vmul.f32 %v1467_v41, %v1461_v36 }
  0x9f   : > { %v1483_v57 = vpop.permute.xlu2 %513 }
  0xa0   : > { %v542_v5 = vmul.f32 %v1479_v53, %v1483_v57 }
  0xa1   : > { %v1463_v37 = vpop.permute.xlu1 %443  ;;  %v1465_v38 = vpop.permute.xlu0 %517 }
  0xa2   : > { %v472_v55 = vmul.f32 %v1473_v49, %v1463_v37  ;;  %v473_v56 = vmul.f32 %v1475_v50, %v1463_v37  ;;  %v543_v37 = vmul.f32 %v1481_v54, %v1483_v57  ;;  %v544_v10 = vmul.f32 %v1479_v53, %v1465_v38 }
  0xa3   : > { %v545_v57 = vmul.f32 %v1481_v54, %v1465_v38 }
  0xa4   : > { %v489_v4 = vadd.f32 %v473_v56, %v419_v0 }
  0xa6   : > { %v559_v12 = vadd.f32 %v543_v37, %v489_v4 }
  0xa8   : > { %v1505_v18 = vpop.permute.xlu2 %387 }
  0xa9   : > { %v1489_v60 = vpop.permute.xlu0 %509 }
  0xaa   : > { %v596_v63 = vpop.permute.xlu1 %595 }
  0xab   : > { %v618_v8 = vmul.f32 %v1485_v58, %v596_v63  ;;  %v619_v9 = vmul.f32 %v1487_v59, %v596_v63  ;;  %v418_v63 = vadd.f32 %v1456_v31, %v362_v51  ;;  %v420_v31 = vadd.f32 %v1441_v27, %v364_v61  ;;  %v706_v27 = vld [vmem:[%s1765_s4 + $0x70] sm:$0xff] }
  0xac   : > { %780 = vperm.xlu1 %1280, %v706_v27   ;;  %v698_v61 = vld [vmem:[%s1765_s4 + $0x30] sm:$0xff] }
  0xad   : > { %v634_v16 = vadd.f32 %v618_v8, %v564_v14  ;;  %v635_v17 = vadd.f32 %v619_v9, %v565_v15  ;;  %v488_v29 = vadd.f32 %v472_v55, %v418_v63  ;;  %v490_v13 = vadd.f32 %v474_v6, %v420_v31 }
  0xae   : > { %v491_v14 = vadd.f32 %v475_v28, %v421_v7  ;;  %v359_v63 = vmul.f32 %v1469_v42, %v1461_v36 }
  0xaf   : > { %v650_v24 = vmul.f32 0.2, %v634_v16  ;;  %v651_v33 = vmul.f32 0.2, %v635_v17  ;;  %v558_v11 = vadd.f32 %v542_v5, %v488_v29 }
  0xb1   : > { %v666_v40 = vmax.f32 %v634_v16, %v650_v24  ;;  %v667_v44 = vmax.f32 %v635_v17, %v651_v33  ;;  %v1511_v45 = vpop.permute.xlu2 %439  ;;  %v560_v17 = vadd.f32 %v544_v10, %v490_v13 }
  0xb2   : > { %v592_v19 = vpop.permute.xlu0 %591  ;;  %v471_v10 = vmul.f32 %v1475_v50, %v1511_v45 }
  0xb3   : > { %v616_v22 = vmul.f32 %v1485_v58, %v592_v19  ;;  %v617_v23 = vmul.f32 %v1487_v59, %v592_v19  ;;  %v1509_v25 = vpop.permute.xlu1 %324  ;;  %v561_v19 = vadd.f32 %v545_v57, %v491_v14 }
  0xb4   : > { %v360_v29 = vmul.f32 %v1467_v41, %v1509_v25  ;;  %v361_v4 = vmul.f32 %v1469_v42, %v1509_v25  ;;  %v470_v25 = vmul.f32 %v1473_v49, %v1511_v45  ;;  %v540_v45 = vmul.f32 %v1479_v53, %v1489_v60 }
  0xb5   : > { %v632_v26 = vadd.f32 %v616_v22, %v562_v20  ;;  %v633_v32 = vadd.f32 %v617_v23, %v563_v21 }
  0xb7   : > { %v648_v34 = vmul.f32 0.2, %v632_v26  ;;  %v649_v35 = vmul.f32 0.2, %v633_v32 }
  0xb9   : > { %v664_v39 = vmax.f32 %v632_v26, %v648_v34  ;;  %v665_v43 = vmax.f32 %v633_v32, %v649_v35  ;;  %v705_v34 = vld [vmem:[%s1765_s4 + $0x68] sm:$0xff] }
  0xba   : > { %v584_v2 = vpop.permute.xlu0 %583  ;;  %v1529_v3 = vpop.permute.xlu2 %309  ;;  %775 = vperm.xlu1 %1280, %v705_v34  }
  0xbb   : > { %v1513_v46 = vpop.permute.xlu1 %382  ;;  %v690_v47 = vpack.c.bf16 %v666_v40, %v664_v39  ;;  %v691_v48 = vpack.c.bf16 %v667_v44, %v665_v43  ;;  %v612_v8 = vmul.f32 %v1485_v58, %v584_v2  ;;  %v613_v9 = vmul.f32 %v1487_v59, %v584_v2 }
  0xbc   : > { %v414_v5 = vadd.f32 %v1513_v46, %v358_v62  ;;  %v415_v37 = vadd.f32 %v1513_v46, %v359_v63 }
  0xbd   : > { %857 = vmatpush.bf16.msra.mxu0 %v690_v47  ;;  %1217 = vmatpush.bf16.msra.mxu2 %v690_v47  ;;  %v628_v15 = vadd.f32 %v612_v8, %v558_v11  ;;  %v629_v30 = vadd.f32 %v613_v9, %v559_v12  ;;  %v417_v9 = vadd.f32 %v1505_v18, %v361_v4  ;;  %v697_v11 = vld [vmem:[%s1765_s4 + $0x28] sm:$0xff]  ;;  %v707_v12 = vld [vmem:[%s1765_s4 + $0x78] sm:$0xff] }
  0xbe   : > { %906 = vmatpush.bf16.msra.mxu1 %v691_v48  ;;  %1221 = vmatpush.bf16.msra.mxu3 %v691_v48 }
  0xbf   : > { %v644_v26 = vmul.f32 0.2, %v628_v15  ;;  %v645_v32 = vmul.f32 0.2, %v629_v30  ;;  %785 = vperm.xlu2 %1281, %v707_v12   ;;  %v700_v12 = vld [vmem:[%s1765_s4 + $0x40] sm:$0xff] }
  0xc1   : > { %v660_v35 = vmax.f32 %v628_v15, %v644_v26  ;;  %v661_v40 = vmax.f32 %v629_v30, %v645_v32  ;;  %v541_v30 = vmul.f32 %v1481_v54, %v1489_v60 }
  0xc2   : > { %765 = vperm.xlu1 %1280, %v703_v52   ;;  %v576_v7 = vpop.permute.xlu0 %575  ;;  %v692_v52 = vld [vmem:[%s1765_s4] sm:$0xff] }
  0xc3   : > { %v506_v22 = vpop.permute.xlu2 %505  ;;  %v608_v57 = vmul.f32 %v1485_v58, %v576_v7  ;;  %v609_v15 = vmul.f32 %v1487_v59, %v576_v7 }
  0xc4   : > { %v436_v1 = vpop.permute.xlu1 %435  ;;  %v538_v31 = vmul.f32 %v1479_v53, %v506_v22  ;;  %v539_v36 = vmul.f32 %v1481_v54, %v506_v22 }
  0xc5   : > { %v468_v0 = vmul.f32 %v1473_v49, %v436_v1  ;;  %v469_v2 = vmul.f32 %v1475_v50, %v436_v1  ;;  %v416_v1 = vadd.f32 %v1505_v18, %v360_v29  ;;  %v704_v18 = vld [vmem:[%s1765_s4 + $0x60] sm:$0xff] }
  0xc6   : > { %770 = vperm.xlu0 %1282, %v704_v18  }
  0xc7   : > { %v484_v6 = vadd.f32 %v468_v0, %v414_v5  ;;  %v485_v28 = vadd.f32 %v469_v2, %v415_v37  ;;  %v486_v27 = vadd.f32 %v470_v25, %v416_v1 }
  0xc9   : > { %v554_v13 = vadd.f32 %v538_v31, %v484_v6  ;;  %v555_v14 = vadd.f32 %v539_v36, %v485_v28 }
  0xca   : > { %740 = vperm.xlu1 %1280, %v698_v61  }
  0xcb   : > { %v624_v22 = vadd.f32 %v608_v57, %v554_v13 }
  0xcc   : > { %v1555_v51 = vpop.permute.xlu2 %377 }
  0xcd   : > { %v588_v16 = vpop.permute.xlu1 %587 }
  0xce   : > { %v614_v20 = vmul.f32 %v1485_v58, %v588_v16  ;;  %v615_v21 = vmul.f32 %v1487_v59, %v588_v16  ;;  %v487_v16 = vadd.f32 %v471_v10, %v417_v9 }
  0xd0   : > { %v630_v38 = vadd.f32 %v614_v20, %v560_v17  ;;  %v631_v23 = vadd.f32 %v615_v21, %v561_v19  ;;  %v354_v17 = vmul.f32 %v1467_v41, %v1529_v3  ;;  %v355_v19 = vmul.f32 %v1469_v42, %v1529_v3 }
  0xd1   : > { %v557_v60 = vadd.f32 %v541_v30, %v487_v16 }
  0xd2   : > { %v646_v24 = vmul.f32 0.2, %v630_v38  ;;  %v647_v33 = vmul.f32 0.2, %v631_v23  ;;  %735 = vperm.xlu1 %1280, %v697_v11   ;;  %v701_v11 = vld [vmem:[%s1765_s4 + $0x48] sm:$0xff] }
  0xd3   : > { %755 = vperm.xlu0 %1282, %v701_v11  }
  0xd4   : > { %v662_v39 = vmax.f32 %v630_v38, %v646_v24  ;;  %v663_v43 = vmax.f32 %v631_v23, %v647_v33  ;;  %v625_v38 = vadd.f32 %v609_v15, %v555_v14  ;;  %v556_v24 = vadd.f32 %v540_v45, %v486_v27  ;;  %v702_v33 = vld [vmem:[%s1765_s4 + $0x50] sm:$0xff] }
  0xd5   : > { %v1560_v56 = vpop.permute.xlu2 %431  ;;  %760 = vperm.xlu2 %1281, %v702_v33   ;;  %v1210_v33 = vld [vmem:[%s1764_s3 + $0x8] sm:$0xff] }
  0xd6   : > { %v315_v44 = vpop.permute.xlu1 %314  ;;  %v688_v47 = vpack.c.bf16 %v662_v39, %v660_v35  ;;  %v689_v48 = vpack.c.bf16 %v663_v43, %v661_v40  ;;  %v641_v63 = vmul.f32 0.2, %v625_v38 }
  0xd7   : > { %v356_v34 = vmul.f32 %v1467_v41, %v315_v44  ;;  %v357_v35 = vmul.f32 %v1469_v42, %v315_v44  ;;  %v640_v41 = vmul.f32 0.2, %v624_v22  ;;  %v466_v42 = vmul.f32 %v1473_v49, %v1560_v56 }
  0xd8   : > { %858 = vmatpush.bf16.msra.mxu0 %v688_v47  ;;  %1218 = vmatpush.bf16.msra.mxu2 %v688_v47  ;;  %v467_v44 = vmul.f32 %v1475_v50, %v1560_v56  ;;  %v657_v7 = vmax.f32 %v625_v38, %v641_v63 }
  0xd9   : > { %907 = vmatpush.bf16.msra.mxu1 %v689_v48  ;;  %1222 = vmatpush.bf16.msra.mxu3 %v689_v48  ;;  %v412_v0 = vadd.f32 %v1555_v51, %v356_v34  ;;  %v413_v2 = vadd.f32 %v1555_v51, %v357_v35  ;;  %v656_v31 = vmax.f32 %v624_v22, %v640_v41  ;;  %v1215_v34 = vld [vmem:[%s1764_s3 + $0x30] sm:$0xff] }
  0xda   : > { %710 = vperm.xlu1 %1280, %v692_v52   ;;  %v1211_v35 = vld [vmem:[%s1764_s3 + $0x10] sm:$0xff] }
  0xdb   : > { %v482_v1 = vadd.f32 %v466_v42, %v412_v0 }
  0xdd   : > { %750 = vperm.xlu2 %1281, %v700_v12  }
  0xde   : > { %v373_v55 = vpop.permute.xlu1 %372  ;;  %v498_v46 = vpop.permute.xlu2 %497 }
  0xdf   : > { %v410_v23 = vadd.f32 %v373_v55, %v354_v17  ;;  %v411_v26 = vadd.f32 %v373_v55, %v355_v19  ;;  %v534_v40 = vmul.f32 %v1479_v53, %v498_v46  ;;  %v535_v43 = vmul.f32 %v1481_v54, %v498_v46 }
  0xe7   : > { %v428_v8 = vpop.permute.xlu1 %427  ;;  %v568_v55 = vpop.permute.xlu2 %567 }
  0xe8   : > { %v464_v20 = vmul.f32 %v1473_v49, %v428_v8  ;;  %v465_v21 = vmul.f32 %v1475_v50, %v428_v8  ;;  %v604_v6 = vmul.f32 %v1485_v58, %v568_v55  ;;  %v605_v28 = vmul.f32 %v1487_v59, %v568_v55  ;;  %v572_v8 = vpop.permute.xlu0 %571 }
  0xe9   : > { %v483_v50 = vadd.f32 %v467_v44, %v413_v2  ;;  %v606_v18 = vmul.f32 %v1485_v58, %v572_v8  ;;  %v607_v13 = vmul.f32 %v1487_v59, %v572_v8 }
  0xea   : > { %v480_v47 = vadd.f32 %v464_v20, %v410_v23  ;;  %v481_v48 = vadd.f32 %v465_v21, %v411_v26  ;;  %v699_v21 = vld [vmem:[%s1765_s4 + $0x38] sm:$0xff]  ;;  %v1209_v23 = vld [vmem:[%s1764_s3] sm:$0xff]  ;;  %v1214_v26 = vld [vmem:[%s1764_s3 + $0x28] sm:$0xff] }
  0xeb   : > { %745 = vperm.xlu2 %1281, %v699_v21  }
  0xec   : > { %v550_v5 = vadd.f32 %v534_v40, %v480_v47  ;;  %v551_v37 = vadd.f32 %v535_v43, %v481_v48  ;;  %v1213_v40 = vld [vmem:[%s1764_s3 + $0x20] sm:$0xff] }
  0xee   : > { %v620_v51 = vadd.f32 %v604_v6, %v550_v5  ;;  %v621_v10 = vadd.f32 %v605_v28, %v551_v37 }
  0xf0   : > { %v580_v32 = vpop.permute.xlu1 %579  ;;  %v637_v30 = vmul.f32 0.2, %v621_v10 }
  0xf1   : > { %v610_v3 = vmul.f32 %v1485_v58, %v580_v32  ;;  %v611_v39 = vmul.f32 %v1487_v59, %v580_v32  ;;  %v696_v59 = vld [vmem:[%s1765_s4 + $0x20] sm:$0xff]  ;;  %v695_v32 = vld [vmem:[%s1765_s4 + $0x18] sm:$0xff] }
  0xf2   : > { %v653_v20 = vmax.f32 %v621_v10, %v637_v30  ;;  %730 = vperm.xlu0 %1282, %v696_v59  }
  0xf3   : > { %v626_v61 = vadd.f32 %v610_v3, %v556_v24  ;;  %v627_v62 = vadd.f32 %v611_v39, %v557_v60  ;;  %v694_v24 = vld [vmem:[%s1765_s4 + $0x10] sm:$0xff]  ;;  %v693_v60 = vld [vmem:[%s1765_s4 + $0x8] sm:$0xff]  ;;  %v1216_v3 = vld [vmem:[%s1764_s3 + $0x38] sm:$0xff] }
  0xf4   : > { %720 = vperm.xlu2 %1281, %v694_v24   ;;  %v1212_v39 = vld [vmem:[%s1764_s3 + $0x18] sm:$0xff] }
  0xf5   : > { %v642_v29 = vmul.f32 0.2, %v626_v61  ;;  %v643_v4 = vmul.f32 0.2, %v627_v62 }
  0xf7   : > { %v658_v36 = vmax.f32 %v626_v61, %v642_v29  ;;  %v659_v49 = vmax.f32 %v627_v62, %v643_v4 }
  0xf9   : > { %v502_v56 = vpop.permute.xlu1 %501  ;;  %v686_v9 = vpack.c.bf16 %v658_v36, %v656_v31  ;;  %v687_v25 = vpack.c.bf16 %v659_v49, %v657_v7 }
  0xfa   : > { %v536_v46 = vmul.f32 %v1479_v53, %v502_v56  ;;  %v537_v57 = vmul.f32 %v1481_v54, %v502_v56  ;;  %v636_v54 = vmul.f32 0.2, %v620_v51  ;;  %725 = vperm.xlu0 %1282, %v695_v32  }
  0xfb   : > { %859 = vmatpush.bf16.msra.mxu0 %v686_v9  ;;  %1219 = vmatpush.bf16.msra.mxu2 %v686_v9 }
  0xfc   : > { %v552_v14 = vadd.f32 %v536_v46, %v482_v1  ;;  %v553_v15 = vadd.f32 %v537_v57, %v483_v50  ;;  %908 = vmatpush.bf16.msra.mxu1 %v687_v25  ;;  %1223 = vmatpush.bf16.msra.mxu3 %v687_v25  ;;  %v652_v17 = vmax.f32 %v620_v51, %v636_v54 }
  0xfd   : > { %715 = vperm.xlu2 %1281, %v693_v60  }
  0xfe   : > { %v622_v53 = vadd.f32 %v606_v18, %v552_v14  ;;  %v623_v45 = vadd.f32 %v607_v13, %v553_v15 }
 0x100   : > { %v638_v27 = vmul.f32 0.2, %v622_v53  ;;  %v639_v16 = vmul.f32 0.2, %v623_v45 }
 0x102   : > { %v654_v19 = vmax.f32 %v622_v53, %v638_v27  ;;  %v655_v58 = vmax.f32 %v623_v45, %v639_v16 }
 0x104   : > { %v684_v22 = vpack.c.bf16 %v654_v19, %v652_v17  ;;  %v685_v38 = vpack.c.bf16 %v655_v58, %v653_v20 }
 0x106   : > { %860 = vmatpush.bf16.msra.mxu0 %v684_v22  ;;  %1220 = vmatpush.bf16.msra.mxu2 %v684_v22 }
 0x107   : > { %909 = vmatpush.bf16.msra.mxu1 %v685_v38  ;;  %1224 = vmatpush.bf16.msra.mxu3 %v685_v38 }
 0x109   : > { %1190 = vmatmul.msk.bf16.vlgmr.msra.gmra.mxu0 %vm828_vm0, %v1209_v23  ;;  %1195 = vmatmul.msk.bf16.vlgmr.msra.gmra.mxu2 %vm828_vm0, %v1214_v26 }
 0x10a   : > { %1198 = vmatmul.msk.bf16.vlgmr.msra.gmra.mxu1 %vm828_vm0, %v1209_v23  ;;  %1203 = vmatmul.msk.bf16.vlgmr.msra.gmra.mxu3 %vm828_vm0, %v1214_v26 }
 0x119   : > { %1191 = vmatmul.msk.bf16.gmra.mxu0 %vm828_vm0, %v1210_v33  ;;  %1196 = vmatmul.msk.bf16.gmra.mxu2 %vm828_vm0, %v1215_v34  ;;  %v1691_v47 = vpop.permute.xlu2 %785 }
 0x11a   : > { %1199 = vmatmul.msk.bf16.gmra.mxu1 %vm828_vm0, %v1210_v33  ;;  %1204 = vmatmul.msk.bf16.gmra.mxu3 %vm828_vm0, %v1215_v34 }
 0x11e   : > { %v781_v43 = vpop.permute.xlu1 %780 }
 0x129   : > { %1192 = vmatmul.msk.bf16.gmra.mxu0 %vm828_vm0, %v1211_v35  ;;  %1197 = vmatmul.msk.bf16.gmra.mxu2 %vm828_vm0, %v1216_v3 }
 0x12a   : > { %1200 = vmatmul.msk.bf16.gmra.mxu1 %vm828_vm0, %v1211_v35  ;;  %1205 = vmatmul.msk.bf16.gmra.mxu3 %vm828_vm0, %v1216_v3 }
 0x12c   : > { %v776_v48 = vpop.permute.xlu1 %775 }
 0x12f   : > { %v761_v52 = vpop.permute.xlu2 %760 }
 0x134   : > { %v766_v55 = vpop.permute.xlu1 %765 }
 0x137   : > { %v1693_v61 = vpop.permute.xlu2 %750 }
 0x138   : > { %v771_v21 = vpop.permute.xlu0 %770 }
 0x139   : > { %1193 = vmatmul.msk.bf16.gmra.mxu0 %vm828_vm0, %v1212_v39 }
 0x13a   : > { %1201 = vmatmul.msk.bf16.gmra.mxu1 %vm828_vm0, %v1212_v39 }
 0x13c   : > { %v1695_v62 = vpop.permute.xlu1 %740 }
 0x144   : > { %v1699_v63 = vpop.permute.xlu1 %735 }
 0x145   : > { %v1697_v41 = vpop.permute.xlu2 %745 }
 0x149   : > { %1194 = vmatmul.msk.bf16.gmra.mxu0 %vm828_vm0, %v1213_v40 }
 0x14a   : > { %1202 = vmatmul.msk.bf16.gmra.mxu1 %vm828_vm0, %v1213_v40 }
 0x14c   : > { %v711_v2 = vpop.permute.xlu1 %710 }
 0x14e   : > { %v1701_v42 = vpop.permute.xlu2 %720 }
 0x157   : > { %v716_v37 = vpop.permute.xlu2 %715 }
 0x186   : > { %v862_v44 = vpop.f32.mrf.mxu0 }
 0x187   : > { %v911_v0 = vpop.f32.mrf.mxu1  ;;  %v863_v29 = vadd.f32 %v862_v44, %v711_v2 }
 0x188   : > { %v912_v4 = vadd.f32 %v911_v0, %v711_v2 }
 0x189   : > { %v951_v31 = vmul.f32 0.2, %v863_v29 }
 0x18a   : > { %v952_v49 = vmul.f32 0.2, %v912_v4 }
 0x18b   : > { %v983_v56 = vmax.f32 %v863_v29, %v951_v31 }
 0x18c   : > { %v887_v5 = vpop.f32.mrf.mxu2  ;;  %v984_v25 = vmax.f32 %v912_v4, %v952_v49 }
 0x18d   : > { %v936_v6 = vpop.f32.mrf.mxu3  ;;  %v888_v33 = vadd.f32 %v887_v5, %v761_v52 }
 0x18e   : > { %v864_v28 = vpop.f32.mrf.mxu0  ;;  %v937_v3 = vadd.f32 %v936_v6, %v761_v52 }
 0x18f   : > { %v865_v36 = vadd.f32 %v864_v28, %v716_v37  ;;  %v913_v7 = vpop.f32.mrf.mxu1  ;;  %v971_v5 = vmul.f32 0.2, %v888_v33 }
 0x190   : > { %v914_v8 = vadd.f32 %v913_v7, %v716_v37  ;;  %v972_v49 = vmul.f32 0.2, %v937_v3 }
 0x191   : > { %v953_v1 = vmul.f32 0.2, %v865_v36 }
 0x192   : > { %v954_v50 = vmul.f32 0.2, %v914_v8 }
 0x193   : > { %v985_v9 = vmax.f32 %v865_v36, %v953_v1 }
 0x194   : > { %v986_v51 = vmax.f32 %v914_v8, %v954_v50  ;;  %v889_v10 = vpop.f32.mrf.mxu2 }
 0x195   : > { %v938_v46 = vpop.f32.mrf.mxu3  ;;  %v1703_v57 = vpack.c.bf16 %v985_v9, %v983_v56  ;;  %v890_v39 = vadd.f32 %v889_v10, %v766_v55  ;;  %v1003_v10 = vmax.f32 %v888_v33, %v971_v5 }
 0x196   : > { %v1705_v11 = vpop.f32.mrf.mxu0  ;;  %v1707_v12 = vpack.c.bf16 %v986_v51, %v984_v25  ;;  %v939_v40 = vadd.f32 %v938_v46, %v766_v55  ;;  %v756_v25 = vpop.permute.xlu0 %755 }
 0x197   : > { %v1709_v18 = vpop.f32.mrf.mxu1  ;;  %v973_v1 = vmul.f32 0.2, %v890_v39 }
 0x198   : > { %v974_v50 = vmul.f32 0.2, %v939_v40 }
 0x199   : > { %v1005_v46 = vmax.f32 %v890_v39, %v973_v1 }
 0x19c   : > { %v892_v13 = vpop.f32.mrf.mxu2 }
 0x19d   : > { %v941_v14 = vpop.f32.mrf.mxu3  ;;  %v893_v22 = vadd.f32 %v892_v13, %v771_v21 }
 0x19e   : > { %v1711_v15 = vpop.f32.mrf.mxu0  ;;  %v942_v26 = vadd.f32 %v941_v14, %v771_v21 }
 0x19f   : > { %v1713_v53 = vpop.f32.mrf.mxu1  ;;  %v975_v2 = vmul.f32 0.2, %v893_v22 }
 0x1a0   : > { %v976_v28 = vmul.f32 0.2, %v942_v26 }
 0x1a1   : > { %v1007_v52 = vmax.f32 %v893_v22, %v975_v2  ;;  %v731_v22 = vpop.permute.xlu0 %730 }
 0x1a4   : > { %v894_v54 = vpop.f32.mrf.mxu2 }
 0x1a5   : > { %v943_v45 = vpop.f32.mrf.mxu3  ;;  %v895_v38 = vadd.f32 %v894_v54, %v776_v48  ;;  %v1004_v54 = vmax.f32 %v937_v3, %v972_v49 }
 0x1a6   : > { %v1715_v30 = vpop.f32.mrf.mxu0  ;;  %v944_v32 = vadd.f32 %v943_v45, %v776_v48  ;;  %v1006_v45 = vmax.f32 %v939_v40, %v974_v50 }
 0x1a7   : > { %v1717_v27 = vpop.f32.mrf.mxu1 }
 0x1a8   : > { %v978_v31 = vmul.f32 0.2, %v944_v32 }
 0x1aa   : > { %v1010_v56 = vmax.f32 %v944_v32, %v978_v31 }
 0x1ac   : > { %v897_v16 = vpop.f32.mrf.mxu2 }
 0x1ad   : > { %v946_v17 = vpop.f32.mrf.mxu3  ;;  %v898_v20 = vadd.f32 %v897_v16, %v781_v43 }
 0x1ae   : > { %v1719_v19 = vpop.f32.mrf.mxu0  ;;  %v947_v59 = vadd.f32 %v946_v17, %v781_v43  ;;  %v977_v43 = vmul.f32 0.2, %v895_v38  ;;  %v1026_v17 = vpack.c.bf16 %v1005_v46, %v1003_v10 }
 0x1af   : > { %v1721_v58 = vpop.f32.mrf.mxu1  ;;  %v979_v23 = vmul.f32 0.2, %v898_v20 }
 0x1b0   : > { %v980_v24 = vmul.f32 0.2, %v947_v59  ;;  %v1009_v6 = vmax.f32 %v895_v38, %v977_v43 }
 0x1b1   : > { %v1011_v29 = vmax.f32 %v898_v20, %v979_v23  ;;  %v1027_v20 = vpack.c.bf16 %v1006_v45, %v1004_v54 }
 0x1b2   : > { %v1012_v48 = vmax.f32 %v947_v59, %v980_v24  ;;  %v1028_v14 = vpack.c.bf16 %v1009_v6, %v1007_v52 }
 0x1b4   : > { %v899_v60 = vpop.f32.mrf.mxu2 }
 0x1b5   : > { %v900_v34 = vadd.f32 %v899_v60, %v1691_v47  ;;  %v948_v35 = vpop.f32.mrf.mxu3 }
 0x1b6   : > { %v949_v44 = vadd.f32 %v948_v35, %v1691_v47  ;;  %v877_v0 = vpop.f32.mrf.mxu0  ;;  %v1008_v47 = vmax.f32 %v942_v26, %v976_v28 }
 0x1b7   : > { %v981_v4 = vmul.f32 0.2, %v900_v34  ;;  %v926_v37 = vpop.f32.mrf.mxu1  ;;  %v878_v60 = vadd.f32 %v877_v0, %v1695_v62  ;;  %v873_v0 = vadd.f32 %v1715_v30, %v731_v22  ;;  %v868_v30 = vadd.f32 %v1705_v11, %v1701_v42 }
 0x1b8   : > { %v982_v36 = vmul.f32 0.2, %v949_v44  ;;  %v1029_v16 = vpack.c.bf16 %v1010_v56, %v1008_v47  ;;  %v927_v3 = vadd.f32 %v926_v37, %v1695_v62  ;;  %v922_v62 = vadd.f32 %v1717_v27, %v731_v22 }
 0x1b9   : > { %v1013_v7 = vmax.f32 %v900_v34, %v981_v4  ;;  %v963_v28 = vmul.f32 0.2, %v878_v60  ;;  %v959_v6 = vmul.f32 0.2, %v873_v0  ;;  %v917_v27 = vadd.f32 %v1709_v18, %v1701_v42 }
 0x1ba   : > { %v1014_v8 = vmax.f32 %v949_v44, %v982_v36  ;;  %v875_v44 = vadd.f32 %v1719_v19, %v1699_v63  ;;  %v964_v37 = vmul.f32 0.2, %v927_v3  ;;  %v960_v50 = vmul.f32 0.2, %v922_v62 }
 0x1bb   : > { %v1030_v55 = vpack.c.bf16 %v1013_v7, %v1011_v29  ;;  %v924_v29 = vadd.f32 %v1721_v58, %v1699_v63  ;;  %v955_v10 = vmul.f32 0.2, %v868_v30  ;;  %v991_v46 = vmax.f32 %v873_v0, %v959_v6 }
 0x1bc   : > { %v1031_v9 = vpack.c.bf16 %v1014_v8, %v1012_v48  ;;  %v961_v5 = vmul.f32 0.2, %v875_v44  ;;  %v996_v47 = vmax.f32 %v927_v3, %v964_v37  ;;  %v992_v11 = vmax.f32 %v922_v62, %v960_v50 }
 0x1bd   : > { %1032 = vmatpush.bf16.msrb.mxu2 %v1030_v55  ;;  %v962_v63 = vmul.f32 0.2, %v924_v29  ;;  %v995_v55 = vmax.f32 %v878_v60, %v963_v28  ;;  %v987_v18 = vmax.f32 %v868_v30, %v955_v10 }
 0x1be   : > { %1045 = vmatpush.bf16.msrb.mxu3 %v1031_v9  ;;  %v879_v51 = vpop.f32.mrf.mxu0  ;;  %v993_v56 = vmax.f32 %v875_v44, %v961_v5 }
 0x1bf   : > { %v928_v13 = vpop.f32.mrf.mxu1  ;;  %v880_v26 = vadd.f32 %v879_v51, %v1697_v41 }
 0x1c0   : > { %v929_v32 = vadd.f32 %v928_v13, %v1697_v41  ;;  %v956_v13 = vmul.f32 0.2, %v917_v27  ;;  %v1020_v54 = vpack.c.bf16 %v993_v56, %v991_v46 }
 0x1c1   : > { %1033 = vmatpush.bf16.msrb.mxu2 %v1028_v14  ;;  %v965_v2 = vmul.f32 0.2, %v880_v26 }
 0x1c2   : > { %1046 = vmatpush.bf16.msrb.mxu3 %v1029_v16  ;;  %v966_v41 = vmul.f32 0.2, %v929_v32  ;;  %v988_v16 = vmax.f32 %v917_v27, %v956_v13 }
 0x1c3   : > { %v997_v49 = vmax.f32 %v880_v26, %v965_v2 }
 0x1c4   : > { %v998_v58 = vmax.f32 %v929_v32, %v966_v41 }
 0x1c5   : > { %1034 = vmatpush.bf16.msrb.mxu2 %v1026_v17  ;;  %v1022_v9 = vpack.c.bf16 %v997_v49, %v995_v55 }
 0x1c6   : > { %1047 = vmatpush.bf16.msrb.mxu3 %v1027_v20  ;;  %v882_v59 = vpop.f32.mrf.mxu0  ;;  %v1023_v51 = vpack.c.bf16 %v998_v58, %v996_v47 }
 0x1c7   : > { %v931_v21 = vpop.f32.mrf.mxu1  ;;  %v883_v38 = vadd.f32 %v882_v59, %v1693_v61  ;;  %v1015_v59 = vld [vmem:[%s1766_s5] sm:$0xf] }
 0x1c8   : > { %v932_v23 = vadd.f32 %v931_v21, %v1693_v61  ;;  %v726_v61 = vpop.permute.xlu0 %725  ;;  %v1064_v21 = vlaneseq }
 0x1c9   : > { %v967_v33 = vmul.f32 0.2, %v883_v38  ;;  %v870_v19 = vadd.f32 %v1711_v15, %v726_v61  ;;  %v919_v1 = vadd.f32 %v1713_v53, %v726_v61  ;;  %v994_v53 = vmax.f32 %v924_v29, %v962_v63 }
 0x1ca   : > { %v968_v39 = vmul.f32 0.2, %v932_v23  ;;  %vm1066_vm2 = vcmp.lt.s32.totalorder %v1064_v21, 256 }
 0x1cb   : > { %v999_v31 = vmax.f32 %v883_v38, %v967_v33  ;;  %v957_v15 = vmul.f32 0.2, %v870_v19  ;;  %v1021_v42 = vpack.c.bf16 %v994_v53, %v992_v11 }
 0x1cc   : > { %v1000_v36 = vmax.f32 %v932_v23, %v968_v39 }
 0x1cd   : > { %v989_v14 = vmax.f32 %v870_v19, %v957_v15 }
 0x1ce   : > { %v884_v24 = vpop.f32.mrf.mxu0 }
 0x1cf   : > { %v885_v34 = vadd.f32 %v884_v24, %v756_v25  ;;  %v933_v35 = vpop.f32.mrf.mxu1  ;;  %v1018_v17 = vpack.c.bf16 %v989_v14, %v987_v18 }
 0x1d0   : > { %v934_v40 = vadd.f32 %v933_v35, %v756_v25  ;;  %v958_v25 = vmul.f32 0.2, %v919_v1 }
 0x1d1   : > { %v969_v43 = vmul.f32 0.2, %v885_v34 }
 0x1d2   : > { %v970_v4 = vmul.f32 0.2, %v934_v40  ;;  %v990_v45 = vmax.f32 %v919_v1, %v958_v25 }
 0x1d3   : > { %v1001_v48 = vmax.f32 %v885_v34, %v969_v43 }
 0x1d4   : > { %v1002_v7 = vmax.f32 %v934_v40, %v970_v4  ;;  %v1019_v20 = vpack.c.bf16 %v990_v45, %v988_v16 }
 0x1d5   : > { %v1024_v8 = vpack.c.bf16 %v1001_v48, %v999_v31 }
 0x1d6   : > { %v1025_v52 = vpack.c.bf16 %v1002_v7, %v1000_v36 }
 0x1d7   : > { %1035 = vmatpush.bf16.msrb.mxu2 %v1024_v8 }
 0x1d8   : > { %1048 = vmatpush.bf16.msrb.mxu3 %v1025_v52 }
 0x1db   : > { %1036 = vmatpush.bf16.msrb.mxu2 %v1022_v9 }
 0x1dc   : > { %1049 = vmatpush.bf16.msrb.mxu3 %v1023_v51 }
 0x1df   : > { %1037 = vmatpush.bf16.msrb.mxu2 %v1020_v54 }
 0x1e0   : > { %1050 = vmatpush.bf16.msrb.mxu3 %v1021_v42 }
 0x1e3   : > { %1038 = vmatpush.bf16.msrb.mxu2 %v1018_v17 }
 0x1e4   : > { %1051 = vmatpush.bf16.msrb.mxu3 %v1019_v20 }
 0x1e7   : > { %1039 = vmatpush.bf16.msrb.mxu2 %v1703_v57 }
 0x1e8   : > { %1052 = vmatpush.bf16.msrb.mxu3 %v1707_v12 }
 0x1ea   : > { %1040 = vmatmul.bf16.vlgmr.msrb.gmra.mxu2 %v1015_v59 }
 0x1eb   : > { %1053 = vmatmul.bf16.vlgmr.msrb.gmra.mxu3 %v1015_v59 }
 0x26d   : > { %v1041_v22 = vpop.f32.mrf.mxu2 }
 0x26e   : > { %v1054_v38 = vpop.f32.mrf.mxu3 }
 0x26f   : > { %v1060_v23 = vrot.slane %v1054_v38, 7 }
 0x271   : > { %v1062_v57 = vsel %vm1061_vm1, %v1041_v22, %v1060_v23 }
 0x272   : > { %1068 = vst.msk [vmem:[%s287_s10] sm:$0x3] %vm1066_vm2, %v1062_v57 }
 0x275   : > { %v1043_v26 = vpop.f32.mrf.mxu2 }
 0x276   : > { %v1056_v32 = vpop.f32.mrf.mxu3 }
 0x277 PF: > { %s16_s23 = sadd.s32 1, %s1305_s23   ;;  %s1768_s21 = smov %s1301_s22 }
 0x278   : > { %p13_p5 = scmp.ge.s32.totalorder %s16_s23, 4   ;;  %s1769_s22 = smov %s1771_s24 }
 0x27a   :  { %15 = sbr.rel (!%p13_p5) target bundleno = 2 (0x2), region = 74 }

</bundles_post_ra>
